<compile_context>
chip_gen: v7x
topology: tpu7x:2x2x1
jax: 0.10.0
libtpu: 0.0.40
codegen_flags: <defaults>
</compile_context>

<pallas_src>
import functools

import jax
import jax.numpy as jnp
import numpy as np
from jax.experimental import pallas as pl
from jax.experimental.pallas import tpu as pltpu


def _elu(v):
    return jnp.where(v > 0, v, jnp.exp(jnp.minimum(v, 0.0)) - 1.0)


# ----------------------------------------------------------------------------
# Fused Pallas kernel: conv1 -> ELU -> conv2 -> ELU -> conv3 -> ELU -> conv4
# ----------------------------------------------------------------------------
def fused_gat_kernel(*refs, layer_cfgs, negative_slope=0.2):
    """refs = (x, adj, [w_ext, bias] per layer ..., out).

    w_ext = [W | W @ a_pack] so one MXU dot per layer yields both the projected
    features hp (= h @ W) and the per-head attention node terms.
    """
    x_ref, adj_ref = refs[0], refs[1]
    out_ref = refs[-1]
    param_refs = refs[2:-1]

    # Additive attention mask, computed once and reused by every head / layer.
    # adj[i, j] = 1 iff edge j -> i (self loops included).
    adj_bias = jnp.where(adj_ref[...] > 0, 0.0, -1e30)          # [N, N]

    h = x_ref[...]                           # current layer input  [N, Fin]
    for li, (heads, C, concat, apply_elu) in enumerate(layer_cfgs):
        w_ext = param_refs[2 * li][...]      # [Fin, heads*C + 2*heads]
        bias = param_refs[2 * li + 1][...]   # [1, out_dim]
        hc = heads * C

        # Single MXU dot: projected features + attention node-terms.
        # NOTE: on v6e/v7x cast h / w_ext to bf16 (keep f32 accumulation) once
        # graphs are big enough for the MXU to matter; at N=16 launch overhead
        # dominates, so keep f32 for fidelity.
        proj = jnp.dot(h, w_ext, preferred_element_type=jnp.float32)  # [N, hc+2h]
        hp = proj[:, :hc]                                             # [N, heads*C]
        a_src = proj[:, hc:hc + heads]                                # [N, heads]
        a_dst = proj[:, hc + heads:hc + 2 * heads]                    # [N, heads]
        a_src_t = jnp.transpose(a_src)       # [heads, N] (single transpose / layer)

        head_outs = []
        for hd in range(heads):
            # e[i, j] = LeakyReLU(a_dst[i] + a_src[j]) + mask
            e = a_dst[:, hd:hd + 1] + a_src_t[hd:hd + 1, :]           # [N, N]
            e = jnp.where(e > 0, e, negative_slope * e)
            e = e + adj_bias                 # masked entries -> ~-1e30
            m = jnp.max(e, axis=1, keepdims=True)
            p = jnp.exp(e - m)               # masked entries underflow to exactly 0
            denom = jnp.sum(p, axis=1, keepdims=True)                 # >= exp(0) > 0
            alpha = p * pl.reciprocal(denom, approx=True)             # EUP divide
            head_outs.append(
                jnp.dot(alpha, hp[:, hd * C:(hd + 1) * C],
                        preferred_element_type=jnp.float32))          # [N, C]

        if concat:
            o = jnp.concatenate(head_outs, axis=-1) + bias            # [N, heads*C]
        else:
            acc = head_outs[0]
            for extra in head_outs[1:]:
                acc = acc + extra
            o = acc * (1.0 / heads) + bias                            # [N, C]
        if apply_elu:
            o = _elu(o)
        h = o

    out_ref[...] = h                          # single store of the final result


# ----------------------------------------------------------------------------
# Wrapper: single pallas_call for the whole eval-mode forward pass
# ----------------------------------------------------------------------------
def gat_forward(x, adj, layer_params):
    """Eval-mode GAT forward: dropout(id) -> elu(conv1..3) -> conv4, fully fused."""
    N = x.shape[0]
    n_layers = len(layer_params)
    cfgs = []
    args = [x, adj]
    for li, lp in enumerate(layer_params):
        concat = li != n_layers - 1           # last layer: concat=False, no ELU
        cfgs.append((lp["heads"], lp["out_ch"], concat, concat))
        # One-time weight packing (done at parameter-prep time, not per call in
        # a real model): [W | W @ a_pack] fuses projection + attention terms.
        w_ext = jnp.concatenate([lp["w"], lp["w"] @ lp["a_pack"]], axis=1)
        args += [w_ext, lp["bias"]]
    out_dim = layer_params[-1]["out_ch"]

    kernel = functools.partial(fused_gat_kernel, layer_cfgs=tuple(cfgs))
    vmem = pl.BlockSpec(memory_space=pltpu.MemorySpace.VMEM)
    return pl.pallas_call(
        kernel,
        out_shape=jax.ShapeDtypeStruct((N, out_dim), jnp.float32),
        in_specs=[vmem] * len(args),
        out_specs=vmem,
    )(*args)


# ----------------------------------------------------------------------------
# Parameter / input construction (deterministic, synthetic)
# ----------------------------------------------------------------------------
def pack_attention(a_src, a_dst):
    """Pack per-head attention vectors into a block-diagonal [heads*C, 2*heads]
    matrix so that (x @ W) @ pack yields [alpha_src | alpha_dst] per node."""
    heads, C = a_src.shape
    pack = jnp.zeros((heads * C, 2 * heads), jnp.float32)
    for hd in range(heads):
        pack = pack.at[hd * C:(hd + 1) * C, hd].set(a_src[hd])
        pack = pack.at[hd * C:(hd + 1) * C, heads + hd].set(a_dst[hd])
    return pack


def build_adjacency(edge_index, num_nodes):
    """Dense mask: adj[i, j] = 1 iff edge j -> i; self loops on the diagonal."""
    src, dst = edge_index[0], edge_index[1]
    adj = jnp.zeros((num_nodes, num_nodes), jnp.float32)
    adj = adj.at[dst, src].set(1.0)
    adj = jnp.maximum(adj, jnp.eye(num_nodes, dtype=jnp.float32))
    return adj


# ----------------------------------------------------------------------------
# Pure-JAX reference (for correctness check)
# ----------------------------------------------------------------------------
def gat_reference(x, adj, layer_params):
    h = x
    n_layers = len(layer_params)
    for li, lp in enumerate(layer_params):
        heads, C = lp["heads"], lp["out_ch"]
        concat = li != n_layers - 1
        N = h.shape[0]
        hp = h @ lp["w"]
        hp3 = hp.reshape(N, heads, C)
        a_src = jnp.einsum("nhc,hc->nh", hp3, lp["a_src"])
        a_dst = jnp.einsum("nhc,hc->nh", hp3, lp["a_dst"])
        e = a_dst[:, None, :] + a_src[None, :, :]          # [dst, src, heads]
        e = jnp.where(e > 0, e, 0.2 * e)
        e = jnp.where(adj[:, :, None] > 0, e, -1e30)
        e = e - e.max(axis=1, keepdims=True)
        p = jnp.exp(e)
        alpha = p / p.sum(axis=1, keepdims=True)
        o = jnp.einsum("ijh,jhc->ihc", alpha, hp3)         # [N, heads, C]
        if concat:
            o = o.reshape(N, heads * C) + lp["bias"]
            o = jnp.where(o > 0, o, jnp.exp(jnp.minimum(o, 0.0)) - 1.0)
        else:
            o = o.mean(axis=1) + lp["bias"]
        h = o
    return h


if __name__ == "__main__":
    # small config consistent with GAT.__init__
    fusion_dim = 32          # config.fusion_dim (conv1 input dim)
    hidden_channels = 8
    out_channels = 4
    heads = 4
    heads_intermediate = 4
    heads_final = 2
    N = 16                   # number of graph nodes
    E = 40                   # number of edges

    root = jax.random.PRNGKey(0)
    kx, ke, k1, k2, k3, k4, kb = jax.random.split(root, 7)

    x = jax.random.normal(kx, (N, fusion_dim), jnp.float32)
    edge_index = jax.random.randint(ke, (2, E), 0, N, dtype=jnp.int32)
    adj = build_adjacency(edge_index, N)

    # layer configs: (in_dim, out_ch, heads)
    cfgs = [
        (fusion_dim, hidden_channels, heads),
        (hidden_channels * heads, hidden_channels, heads_intermediate),
        (hidden_channels * heads_intermediate, hidden_channels, heads_intermediate),
        (hidden_channels * heads_intermediate, out_channels, heads_final),
    ]
    keys = [k1, k2, k3, k4]
    bkeys = jax.random.split(kb, 4)

    layer_params = []
    for i, (in_dim, oc, hd) in enumerate(cfgs):
        kk = jax.random.split(keys[i], 3)
        scale = (2.0 / (in_dim + hd * oc)) ** 0.5
        w = jax.random.normal(kk[0], (in_dim, hd * oc), jnp.float32) * scale
        a_src = jax.random.normal(kk[1], (hd, oc), jnp.float32) * 0.1
        a_dst = jax.random.normal(kk[2], (hd, oc), jnp.float32) * 0.1
        concat = (i != len(cfgs) - 1)
        out_dim = hd * oc if concat else oc
        bias = jax.random.normal(bkeys[i], (1, out_dim), jnp.float32) * 0.05
        layer_params.append(dict(
            w=w, a_src=a_src, a_dst=a_dst,
            a_pack=pack_attention(a_src, a_dst),
            bias=bias, heads=hd, out_ch=oc))

    out = jax.block_until_ready(gat_forward(x, adj, layer_params))
    ref = gat_reference(x, adj, layer_params)

    assert out.shape == (N, out_channels), out.shape
    assert bool(jnp.all(jnp.isfinite(out)))
    np.testing.assert_allclose(np.asarray(out), np.asarray(ref), rtol=5e-2, atol=5e-2)
    print("KERNEL_OK")
</pallas_src>

<mosaic_0001>
module attributes {stable_mosaic.version = 11 : i64} {
  func.func @fused_gat_kernel(%arg0: memref<16x32xf32, #tpu.memory_space<vmem>>, %arg1: memref<16x16xf32, #tpu.memory_space<vmem>>, %arg2: memref<32x40xf32, #tpu.memory_space<vmem>>, %arg3: memref<1x32xf32, #tpu.memory_space<vmem>>, %arg4: memref<32x40xf32, #tpu.memory_space<vmem>>, %arg5: memref<1x32xf32, #tpu.memory_space<vmem>>, %arg6: memref<32x40xf32, #tpu.memory_space<vmem>>, %arg7: memref<1x32xf32, #tpu.memory_space<vmem>>, %arg8: memref<32x12xf32, #tpu.memory_space<vmem>>, %arg9: memref<1x4xf32, #tpu.memory_space<vmem>>, %arg10: memref<16x4xf32, #tpu.memory_space<vmem>>) attributes {dimension_semantics = [], scalar_prefetch = 0 : i64, scratch_operands = 0 : i64, tpu.core_type = #tpu.core_type<tc>} {
    %c0 = arith.constant 0 : index
    %c0_0 = arith.constant 0 : index
    %0 = vector.load %arg1[%c0, %c0_0] : memref<16x16xf32, #tpu.memory_space<vmem>>, vector<16x16xf32>
    %cst = arith.constant 0.000000e+00 : f32
    %1 = vector.broadcast %cst : f32 to vector<16x16xf32>
    %2 = arith.cmpf ogt, %0, %1 : vector<16x16xf32>
    %cst_1 = arith.constant 0.000000e+00 : f32
    %cst_2 = arith.constant -1.000000e+30 : f32
    %3 = vector.broadcast %cst_1 : f32 to vector<16x16xf32>
    %4 = vector.broadcast %cst_2 : f32 to vector<16x16xf32>
    %5 = arith.select %2, %3, %4 : vector<16x16xi1>, vector<16x16xf32>
    %c0_3 = arith.constant 0 : index
    %c0_4 = arith.constant 0 : index
    %6 = vector.load %arg0[%c0_3, %c0_4] : memref<16x32xf32, #tpu.memory_space<vmem>>, vector<16x32xf32>
    %c0_5 = arith.constant 0 : index
    %c0_6 = arith.constant 0 : index
    %7 = vector.load %arg2[%c0_5, %c0_6] : memref<32x40xf32, #tpu.memory_space<vmem>>, vector<32x40xf32>
    %c0_7 = arith.constant 0 : index
    %c0_8 = arith.constant 0 : index
    %8 = vector.load %arg3[%c0_7, %c0_8] : memref<1x32xf32, #tpu.memory_space<vmem>>, vector<1x32xf32>
    %cst_9 = arith.constant dense<0.000000e+00> : vector<16x40xf32>
    %9 = tpu.matmul %6, %7, %cst_9 {dimension_numbers = #tpu.dot_dimension_numbers<[1], [0], [0], [1], [0, 0, 1, 1], [], []>} : vector<16x32xf32>, vector<32x40xf32>, vector<16x40xf32> -> vector<16x40xf32>
    %10 = vector.extract_strided_slice %9 {offsets = [0, 0], sizes = [16, 32], strides = [1, 1]} : vector<16x40xf32> to vector<16x32xf32>
    %11 = vector.extract_strided_slice %9 {offsets = [0, 32], sizes = [16, 4], strides = [1, 1]} : vector<16x40xf32> to vector<16x4xf32>
    %12 = vector.extract_strided_slice %9 {offsets = [0, 36], sizes = [16, 4], strides = [1, 1]} : vector<16x40xf32> to vector<16x4xf32>
    %13 = tpu.transpose %11, [1, 0] : vector<16x4xf32> -> vector<4x16xf32>
    %14 = vector.extract_strided_slice %12 {offsets = [0, 0], sizes = [16, 1], strides = [1, 1]} : vector<16x4xf32> to vector<16x1xf32>
    %15 = vector.extract_strided_slice %13 {offsets = [0, 0], sizes = [1, 16], strides = [1, 1]} : vector<4x16xf32> to vector<1x16xf32>
    %16 = vector.broadcast %14 : vector<16x1xf32> to vector<16x16xf32>
    %17 = vector.broadcast %15 : vector<1x16xf32> to vector<16x16xf32>
    %18 = arith.addf %16, %17 : vector<16x16xf32>
    %cst_10 = arith.constant 0.000000e+00 : f32
    %19 = vector.broadcast %cst_10 : f32 to vector<16x16xf32>
    %20 = arith.cmpf ogt, %18, %19 : vector<16x16xf32>
    %cst_11 = arith.constant 2.000000e-01 : f32
    %21 = vector.broadcast %cst_11 : f32 to vector<16x16xf32>
    %22 = arith.mulf %21, %18 : vector<16x16xf32>
    %23 = arith.select %20, %18, %22 : vector<16x16xi1>, vector<16x16xf32>
    %24 = arith.addf %23, %5 : vector<16x16xf32>
    %cst_12 = arith.constant dense<0xFF800000> : vector<16xf32>
    %25 = vector.multi_reduction <maximumf>, %24, %cst_12 [1] : vector<16x16xf32> to vector<16xf32>
    %26 = vector.shape_cast %25 : vector<16xf32> to vector<16x1xf32>
    %27 = vector.broadcast %26 : vector<16x1xf32> to vector<16x16xf32>
    %28 = arith.subf %24, %27 : vector<16x16xf32>
    %29 = math.exp %28 : vector<16x16xf32>
    %cst_13 = arith.constant dense<0.000000e+00> : vector<16xf32>
    %30 = vector.multi_reduction <add>, %29, %cst_13 [1] : vector<16x16xf32> to vector<16xf32>
    %31 = vector.shape_cast %30 : vector<16xf32> to vector<16x1xf32>
    %32 = tpu.reciprocal %31 {approx = true} : vector<16x1xf32> -> vector<16x1xf32>
    %33 = vector.broadcast %32 : vector<16x1xf32> to vector<16x16xf32>
    %34 = arith.mulf %29, %33 : vector<16x16xf32>
    %35 = vector.extract_strided_slice %10 {offsets = [0, 0], sizes = [16, 8], strides = [1, 1]} : vector<16x32xf32> to vector<16x8xf32>
    %cst_14 = arith.constant dense<0.000000e+00> : vector<16x8xf32>
    %36 = tpu.matmul %34, %35, %cst_14 {dimension_numbers = #tpu.dot_dimension_numbers<[1], [0], [0], [1], [0, 0, 1, 1], [], []>} : vector<16x16xf32>, vector<16x8xf32>, vector<16x8xf32> -> vector<16x8xf32>
    %37 = vector.extract_strided_slice %12 {offsets = [0, 1], sizes = [16, 1], strides = [1, 1]} : vector<16x4xf32> to vector<16x1xf32>
    %38 = vector.extract_strided_slice %13 {offsets = [1, 0], sizes = [1, 16], strides = [1, 1]} : vector<4x16xf32> to vector<1x16xf32>
    %39 = vector.broadcast %37 : vector<16x1xf32> to vector<16x16xf32>
    %40 = vector.broadcast %38 : vector<1x16xf32> to vector<16x16xf32>
    %41 = arith.addf %39, %40 : vector<16x16xf32>
    %cst_15 = arith.constant 0.000000e+00 : f32
    %42 = vector.broadcast %cst_15 : f32 to vector<16x16xf32>
    %43 = arith.cmpf ogt, %41, %42 : vector<16x16xf32>
    %cst_16 = arith.constant 2.000000e-01 : f32
    %44 = vector.broadcast %cst_16 : f32 to vector<16x16xf32>
    %45 = arith.mulf %44, %41 : vector<16x16xf32>
    %46 = arith.select %43, %41, %45 : vector<16x16xi1>, vector<16x16xf32>
    %47 = arith.addf %46, %5 : vector<16x16xf32>
    %cst_17 = arith.constant dense<0xFF800000> : vector<16xf32>
    %48 = vector.multi_reduction <maximumf>, %47, %cst_17 [1] : vector<16x16xf32> to vector<16xf32>
    %49 = vector.shape_cast %48 : vector<16xf32> to vector<16x1xf32>
    %50 = vector.broadcast %49 : vector<16x1xf32> to vector<16x16xf32>
    %51 = arith.subf %47, %50 : vector<16x16xf32>
    %52 = math.exp %51 : vector<16x16xf32>
    %cst_18 = arith.constant dense<0.000000e+00> : vector<16xf32>
    %53 = vector.multi_reduction <add>, %52, %cst_18 [1] : vector<16x16xf32> to vector<16xf32>
    %54 = vector.shape_cast %53 : vector<16xf32> to vector<16x1xf32>
    %55 = tpu.reciprocal %54 {approx = true} : vector<16x1xf32> -> vector<16x1xf32>
    %56 = vector.broadcast %55 : vector<16x1xf32> to vector<16x16xf32>
    %57 = arith.mulf %52, %56 : vector<16x16xf32>
    %58 = vector.extract_strided_slice %10 {offsets = [0, 8], sizes = [16, 8], strides = [1, 1]} : vector<16x32xf32> to vector<16x8xf32>
    %cst_19 = arith.constant dense<0.000000e+00> : vector<16x8xf32>
    %59 = tpu.matmul %57, %58, %cst_19 {dimension_numbers = #tpu.dot_dimension_numbers<[1], [0], [0], [1], [0, 0, 1, 1], [], []>} : vector<16x16xf32>, vector<16x8xf32>, vector<16x8xf32> -> vector<16x8xf32>
    %60 = vector.extract_strided_slice %12 {offsets = [0, 2], sizes = [16, 1], strides = [1, 1]} : vector<16x4xf32> to vector<16x1xf32>
    %61 = vector.extract_strided_slice %13 {offsets = [2, 0], sizes = [1, 16], strides = [1, 1]} : vector<4x16xf32> to vector<1x16xf32>
    %62 = vector.broadcast %60 : vector<16x1xf32> to vector<16x16xf32>
    %63 = vector.broadcast %61 : vector<1x16xf32> to vector<16x16xf32>
    %64 = arith.addf %62, %63 : vector<16x16xf32>
    %cst_20 = arith.constant 0.000000e+00 : f32
    %65 = vector.broadcast %cst_20 : f32 to vector<16x16xf32>
    %66 = arith.cmpf ogt, %64, %65 : vector<16x16xf32>
    %cst_21 = arith.constant 2.000000e-01 : f32
    %67 = vector.broadcast %cst_21 : f32 to vector<16x16xf32>
    %68 = arith.mulf %67, %64 : vector<16x16xf32>
    %69 = arith.select %66, %64, %68 : vector<16x16xi1>, vector<16x16xf32>
    %70 = arith.addf %69, %5 : vector<16x16xf32>
    %cst_22 = arith.constant dense<0xFF800000> : vector<16xf32>
    %71 = vector.multi_reduction <maximumf>, %70, %cst_22 [1] : vector<16x16xf32> to vector<16xf32>
    %72 = vector.shape_cast %71 : vector<16xf32> to vector<16x1xf32>
    %73 = vector.broadcast %72 : vector<16x1xf32> to vector<16x16xf32>
    %74 = arith.subf %70, %73 : vector<16x16xf32>
    %75 = math.exp %74 : vector<16x16xf32>
    %cst_23 = arith.constant dense<0.000000e+00> : vector<16xf32>
    %76 = vector.multi_reduction <add>, %75, %cst_23 [1] : vector<16x16xf32> to vector<16xf32>
    %77 = vector.shape_cast %76 : vector<16xf32> to vector<16x1xf32>
    %78 = tpu.reciprocal %77 {approx = true} : vector<16x1xf32> -> vector<16x1xf32>
    %79 = vector.broadcast %78 : vector<16x1xf32> to vector<16x16xf32>
    %80 = arith.mulf %75, %79 : vector<16x16xf32>
    %81 = vector.extract_strided_slice %10 {offsets = [0, 16], sizes = [16, 8], strides = [1, 1]} : vector<16x32xf32> to vector<16x8xf32>
    %cst_24 = arith.constant dense<0.000000e+00> : vector<16x8xf32>
    %82 = tpu.matmul %80, %81, %cst_24 {dimension_numbers = #tpu.dot_dimension_numbers<[1], [0], [0], [1], [0, 0, 1, 1], [], []>} : vector<16x16xf32>, vector<16x8xf32>, vector<16x8xf32> -> vector<16x8xf32>
    %83 = vector.extract_strided_slice %12 {offsets = [0, 3], sizes = [16, 1], strides = [1, 1]} : vector<16x4xf32> to vector<16x1xf32>
    %84 = vector.extract_strided_slice %13 {offsets = [3, 0], sizes = [1, 16], strides = [1, 1]} : vector<4x16xf32> to vector<1x16xf32>
    %85 = vector.broadcast %83 : vector<16x1xf32> to vector<16x16xf32>
    %86 = vector.broadcast %84 : vector<1x16xf32> to vector<16x16xf32>
    %87 = arith.addf %85, %86 : vector<16x16xf32>
    %cst_25 = arith.constant 0.000000e+00 : f32
    %88 = vector.broadcast %cst_25 : f32 to vector<16x16xf32>
    %89 = arith.cmpf ogt, %87, %88 : vector<16x16xf32>
    %cst_26 = arith.constant 2.000000e-01 : f32
    %90 = vector.broadcast %cst_26 : f32 to vector<16x16xf32>
    %91 = arith.mulf %90, %87 : vector<16x16xf32>
    %92 = arith.select %89, %87, %91 : vector<16x16xi1>, vector<16x16xf32>
    %93 = arith.addf %92, %5 : vector<16x16xf32>
    %cst_27 = arith.constant dense<0xFF800000> : vector<16xf32>
    %94 = vector.multi_reduction <maximumf>, %93, %cst_27 [1] : vector<16x16xf32> to vector<16xf32>
    %95 = vector.shape_cast %94 : vector<16xf32> to vector<16x1xf32>
    %96 = vector.broadcast %95 : vector<16x1xf32> to vector<16x16xf32>
    %97 = arith.subf %93, %96 : vector<16x16xf32>
    %98 = math.exp %97 : vector<16x16xf32>
    %cst_28 = arith.constant dense<0.000000e+00> : vector<16xf32>
    %99 = vector.multi_reduction <add>, %98, %cst_28 [1] : vector<16x16xf32> to vector<16xf32>
    %100 = vector.shape_cast %99 : vector<16xf32> to vector<16x1xf32>
    %101 = tpu.reciprocal %100 {approx = true} : vector<16x1xf32> -> vector<16x1xf32>
    %102 = vector.broadcast %101 : vector<16x1xf32> to vector<16x16xf32>
    %103 = arith.mulf %98, %102 : vector<16x16xf32>
    %104 = vector.extract_strided_slice %10 {offsets = [0, 24], sizes = [16, 8], strides = [1, 1]} : vector<16x32xf32> to vector<16x8xf32>
    %cst_29 = arith.constant dense<0.000000e+00> : vector<16x8xf32>
    %105 = tpu.matmul %103, %104, %cst_29 {dimension_numbers = #tpu.dot_dimension_numbers<[1], [0], [0], [1], [0, 0, 1, 1], [], []>} : vector<16x16xf32>, vector<16x8xf32>, vector<16x8xf32> -> vector<16x8xf32>
    %106 = tpu.concatenate %36, %59, %82, %105 in 1 : vector<16x8xf32>, vector<16x8xf32>, vector<16x8xf32>, vector<16x8xf32> -> vector<16x32xf32>
    %107 = vector.broadcast %8 : vector<1x32xf32> to vector<16x32xf32>
    %108 = arith.addf %106, %107 : vector<16x32xf32>
    %cst_30 = arith.constant 0.000000e+00 : f32
    %109 = vector.broadcast %cst_30 : f32 to vector<16x32xf32>
    %110 = arith.cmpf ogt, %108, %109 : vector<16x32xf32>
    %cst_31 = arith.constant 0.000000e+00 : f32
    %111 = vector.broadcast %cst_31 : f32 to vector<16x32xf32>
    %112 = arith.minimumf %108, %111 : vector<16x32xf32>
    %113 = math.exp %112 : vector<16x32xf32>
    %cst_32 = arith.constant 1.000000e+00 : f32
    %114 = vector.broadcast %cst_32 : f32 to vector<16x32xf32>
    %115 = arith.subf %113, %114 : vector<16x32xf32>
    %116 = arith.select %110, %108, %115 : vector<16x32xi1>, vector<16x32xf32>
    %c0_33 = arith.constant 0 : index
    %c0_34 = arith.constant 0 : index
    %117 = vector.load %arg4[%c0_33, %c0_34] : memref<32x40xf32, #tpu.memory_space<vmem>>, vector<32x40xf32>
    %c0_35 = arith.constant 0 : index
    %c0_36 = arith.constant 0 : index
    %118 = vector.load %arg5[%c0_35, %c0_36] : memref<1x32xf32, #tpu.memory_space<vmem>>, vector<1x32xf32>
    %cst_37 = arith.constant dense<0.000000e+00> : vector<16x40xf32>
    %119 = tpu.matmul %116, %117, %cst_37 {dimension_numbers = #tpu.dot_dimension_numbers<[1], [0], [0], [1], [0, 0, 1, 1], [], []>} : vector<16x32xf32>, vector<32x40xf32>, vector<16x40xf32> -> vector<16x40xf32>
    %120 = vector.extract_strided_slice %119 {offsets = [0, 0], sizes = [16, 32], strides = [1, 1]} : vector<16x40xf32> to vector<16x32xf32>
    %121 = vector.extract_strided_slice %119 {offsets = [0, 32], sizes = [16, 4], strides = [1, 1]} : vector<16x40xf32> to vector<16x4xf32>
    %122 = vector.extract_strided_slice %119 {offsets = [0, 36], sizes = [16, 4], strides = [1, 1]} : vector<16x40xf32> to vector<16x4xf32>
    %123 = tpu.transpose %121, [1, 0] : vector<16x4xf32> -> vector<4x16xf32>
    %124 = vector.extract_strided_slice %122 {offsets = [0, 0], sizes = [16, 1], strides = [1, 1]} : vector<16x4xf32> to vector<16x1xf32>
    %125 = vector.extract_strided_slice %123 {offsets = [0, 0], sizes = [1, 16], strides = [1, 1]} : vector<4x16xf32> to vector<1x16xf32>
    %126 = vector.broadcast %124 : vector<16x1xf32> to vector<16x16xf32>
    %127 = vector.broadcast %125 : vector<1x16xf32> to vector<16x16xf32>
    %128 = arith.addf %126, %127 : vector<16x16xf32>
    %cst_38 = arith.constant 0.000000e+00 : f32
    %129 = vector.broadcast %cst_38 : f32 to vector<16x16xf32>
    %130 = arith.cmpf ogt, %128, %129 : vector<16x16xf32>
    %cst_39 = arith.constant 2.000000e-01 : f32
    %131 = vector.broadcast %cst_39 : f32 to vector<16x16xf32>
    %132 = arith.mulf %131, %128 : vector<16x16xf32>
    %133 = arith.select %130, %128, %132 : vector<16x16xi1>, vector<16x16xf32>
    %134 = arith.addf %133, %5 : vector<16x16xf32>
    %cst_40 = arith.constant dense<0xFF800000> : vector<16xf32>
    %135 = vector.multi_reduction <maximumf>, %134, %cst_40 [1] : vector<16x16xf32> to vector<16xf32>
    %136 = vector.shape_cast %135 : vector<16xf32> to vector<16x1xf32>
    %137 = vector.broadcast %136 : vector<16x1xf32> to vector<16x16xf32>
    %138 = arith.subf %134, %137 : vector<16x16xf32>
    %139 = math.exp %138 : vector<16x16xf32>
    %cst_41 = arith.constant dense<0.000000e+00> : vector<16xf32>
    %140 = vector.multi_reduction <add>, %139, %cst_41 [1] : vector<16x16xf32> to vector<16xf32>
    %141 = vector.shape_cast %140 : vector<16xf32> to vector<16x1xf32>
    %142 = tpu.reciprocal %141 {approx = true} : vector<16x1xf32> -> vector<16x1xf32>
    %143 = vector.broadcast %142 : vector<16x1xf32> to vector<16x16xf32>
    %144 = arith.mulf %139, %143 : vector<16x16xf32>
    %145 = vector.extract_strided_slice %120 {offsets = [0, 0], sizes = [16, 8], strides = [1, 1]} : vector<16x32xf32> to vector<16x8xf32>
    %cst_42 = arith.constant dense<0.000000e+00> : vector<16x8xf32>
    %146 = tpu.matmul %144, %145, %cst_42 {dimension_numbers = #tpu.dot_dimension_numbers<[1], [0], [0], [1], [0, 0, 1, 1], [], []>} : vector<16x16xf32>, vector<16x8xf32>, vector<16x8xf32> -> vector<16x8xf32>
    %147 = vector.extract_strided_slice %122 {offsets = [0, 1], sizes = [16, 1], strides = [1, 1]} : vector<16x4xf32> to vector<16x1xf32>
    %148 = vector.extract_strided_slice %123 {offsets = [1, 0], sizes = [1, 16], strides = [1, 1]} : vector<4x16xf32> to vector<1x16xf32>
    %149 = vector.broadcast %147 : vector<16x1xf32> to vector<16x16xf32>
    %150 = vector.broadcast %148 : vector<1x16xf32> to vector<16x16xf32>
    %151 = arith.addf %149, %150 : vector<16x16xf32>
    %cst_43 = arith.constant 0.000000e+00 : f32
    %152 = vector.broadcast %cst_43 : f32 to vector<16x16xf32>
    %153 = arith.cmpf ogt, %151, %152 : vector<16x16xf32>
    %cst_44 = arith.constant 2.000000e-01 : f32
    %154 = vector.broadcast %cst_44 : f32 to vector<16x16xf32>
    %155 = arith.mulf %154, %151 : vector<16x16xf32>
    %156 = arith.select %153, %151, %155 : vector<16x16xi1>, vector<16x16xf32>
    %157 = arith.addf %156, %5 : vector<16x16xf32>
    %cst_45 = arith.constant dense<0xFF800000> : vector<16xf32>
    %158 = vector.multi_reduction <maximumf>, %157, %cst_45 [1] : vector<16x16xf32> to vector<16xf32>
    %159 = vector.shape_cast %158 : vector<16xf32> to vector<16x1xf32>
    %160 = vector.broadcast %159 : vector<16x1xf32> to vector<16x16xf32>
    %161 = arith.subf %157, %160 : vector<16x16xf32>
    %162 = math.exp %161 : vector<16x16xf32>
    %cst_46 = arith.constant dense<0.000000e+00> : vector<16xf32>
    %163 = vector.multi_reduction <add>, %162, %cst_46 [1] : vector<16x16xf32> to vector<16xf32>
    %164 = vector.shape_cast %163 : vector<16xf32> to vector<16x1xf32>
    %165 = tpu.reciprocal %164 {approx = true} : vector<16x1xf32> -> vector<16x1xf32>
    %166 = vector.broadcast %165 : vector<16x1xf32> to vector<16x16xf32>
    %167 = arith.mulf %162, %166 : vector<16x16xf32>
    %168 = vector.extract_strided_slice %120 {offsets = [0, 8], sizes = [16, 8], strides = [1, 1]} : vector<16x32xf32> to vector<16x8xf32>
    %cst_47 = arith.constant dense<0.000000e+00> : vector<16x8xf32>
    %169 = tpu.matmul %167, %168, %cst_47 {dimension_numbers = #tpu.dot_dimension_numbers<[1], [0], [0], [1], [0, 0, 1, 1], [], []>} : vector<16x16xf32>, vector<16x8xf32>, vector<16x8xf32> -> vector<16x8xf32>
    %170 = vector.extract_strided_slice %122 {offsets = [0, 2], sizes = [16, 1], strides = [1, 1]} : vector<16x4xf32> to vector<16x1xf32>
    %171 = vector.extract_strided_slice %123 {offsets = [2, 0], sizes = [1, 16], strides = [1, 1]} : vector<4x16xf32> to vector<1x16xf32>
    %172 = vector.broadcast %170 : vector<16x1xf32> to vector<16x16xf32>
    %173 = vector.broadcast %171 : vector<1x16xf32> to vector<16x16xf32>
    %174 = arith.addf %172, %173 : vector<16x16xf32>
    %cst_48 = arith.constant 0.000000e+00 : f32
    %175 = vector.broadcast %cst_48 : f32 to vector<16x16xf32>
    %176 = arith.cmpf ogt, %174, %175 : vector<16x16xf32>
    %cst_49 = arith.constant 2.000000e-01 : f32
    %177 = vector.broadcast %cst_49 : f32 to vector<16x16xf32>
    %178 = arith.mulf %177, %174 : vector<16x16xf32>
    %179 = arith.select %176, %174, %178 : vector<16x16xi1>, vector<16x16xf32>
    %180 = arith.addf %179, %5 : vector<16x16xf32>
    %cst_50 = arith.constant dense<0xFF800000> : vector<16xf32>
    %181 = vector.multi_reduction <maximumf>, %180, %cst_50 [1] : vector<16x16xf32> to vector<16xf32>
    %182 = vector.shape_cast %181 : vector<16xf32> to vector<16x1xf32>
    %183 = vector.broadcast %182 : vector<16x1xf32> to vector<16x16xf32>
    %184 = arith.subf %180, %183 : vector<16x16xf32>
    %185 = math.exp %184 : vector<16x16xf32>
    %cst_51 = arith.constant dense<0.000000e+00> : vector<16xf32>
    %186 = vector.multi_reduction <add>, %185, %cst_51 [1] : vector<16x16xf32> to vector<16xf32>
    %187 = vector.shape_cast %186 : vector<16xf32> to vector<16x1xf32>
    %188 = tpu.reciprocal %187 {approx = true} : vector<16x1xf32> -> vector<16x1xf32>
    %189 = vector.broadcast %188 : vector<16x1xf32> to vector<16x16xf32>
    %190 = arith.mulf %185, %189 : vector<16x16xf32>
    %191 = vector.extract_strided_slice %120 {offsets = [0, 16], sizes = [16, 8], strides = [1, 1]} : vector<16x32xf32> to vector<16x8xf32>
    %cst_52 = arith.constant dense<0.000000e+00> : vector<16x8xf32>
    %192 = tpu.matmul %190, %191, %cst_52 {dimension_numbers = #tpu.dot_dimension_numbers<[1], [0], [0], [1], [0, 0, 1, 1], [], []>} : vector<16x16xf32>, vector<16x8xf32>, vector<16x8xf32> -> vector<16x8xf32>
    %193 = vector.extract_strided_slice %122 {offsets = [0, 3], sizes = [16, 1], strides = [1, 1]} : vector<16x4xf32> to vector<16x1xf32>
    %194 = vector.extract_strided_slice %123 {offsets = [3, 0], sizes = [1, 16], strides = [1, 1]} : vector<4x16xf32> to vector<1x16xf32>
    %195 = vector.broadcast %193 : vector<16x1xf32> to vector<16x16xf32>
    %196 = vector.broadcast %194 : vector<1x16xf32> to vector<16x16xf32>
    %197 = arith.addf %195, %196 : vector<16x16xf32>
    %cst_53 = arith.constant 0.000000e+00 : f32
    %198 = vector.broadcast %cst_53 : f32 to vector<16x16xf32>
    %199 = arith.cmpf ogt, %197, %198 : vector<16x16xf32>
    %cst_54 = arith.constant 2.000000e-01 : f32
    %200 = vector.broadcast %cst_54 : f32 to vector<16x16xf32>
    %201 = arith.mulf %200, %197 : vector<16x16xf32>
    %202 = arith.select %199, %197, %201 : vector<16x16xi1>, vector<16x16xf32>
    %203 = arith.addf %202, %5 : vector<16x16xf32>
    %cst_55 = arith.constant dense<0xFF800000> : vector<16xf32>
    %204 = vector.multi_reduction <maximumf>, %203, %cst_55 [1] : vector<16x16xf32> to vector<16xf32>
    %205 = vector.shape_cast %204 : vector<16xf32> to vector<16x1xf32>
    %206 = vector.broadcast %205 : vector<16x1xf32> to vector<16x16xf32>
    %207 = arith.subf %203, %206 : vector<16x16xf32>
    %208 = math.exp %207 : vector<16x16xf32>
    %cst_56 = arith.constant dense<0.000000e+00> : vector<16xf32>
    %209 = vector.multi_reduction <add>, %208, %cst_56 [1] : vector<16x16xf32> to vector<16xf32>
    %210 = vector.shape_cast %209 : vector<16xf32> to vector<16x1xf32>
    %211 = tpu.reciprocal %210 {approx = true} : vector<16x1xf32> -> vector<16x1xf32>
    %212 = vector.broadcast %211 : vector<16x1xf32> to vector<16x16xf32>
    %213 = arith.mulf %208, %212 : vector<16x16xf32>
    %214 = vector.extract_strided_slice %120 {offsets = [0, 24], sizes = [16, 8], strides = [1, 1]} : vector<16x32xf32> to vector<16x8xf32>
    %cst_57 = arith.constant dense<0.000000e+00> : vector<16x8xf32>
    %215 = tpu.matmul %213, %214, %cst_57 {dimension_numbers = #tpu.dot_dimension_numbers<[1], [0], [0], [1], [0, 0, 1, 1], [], []>} : vector<16x16xf32>, vector<16x8xf32>, vector<16x8xf32> -> vector<16x8xf32>
    %216 = tpu.concatenate %146, %169, %192, %215 in 1 : vector<16x8xf32>, vector<16x8xf32>, vector<16x8xf32>, vector<16x8xf32> -> vector<16x32xf32>
    %217 = vector.broadcast %118 : vector<1x32xf32> to vector<16x32xf32>
    %218 = arith.addf %216, %217 : vector<16x32xf32>
    %cst_58 = arith.constant 0.000000e+00 : f32
    %219 = vector.broadcast %cst_58 : f32 to vector<16x32xf32>
    %220 = arith.cmpf ogt, %218, %219 : vector<16x32xf32>
    %cst_59 = arith.constant 0.000000e+00 : f32
    %221 = vector.broadcast %cst_59 : f32 to vector<16x32xf32>
    %222 = arith.minimumf %218, %221 : vector<16x32xf32>
    %223 = math.exp %222 : vector<16x32xf32>
    %cst_60 = arith.constant 1.000000e+00 : f32
    %224 = vector.broadcast %cst_60 : f32 to vector<16x32xf32>
    %225 = arith.subf %223, %224 : vector<16x32xf32>
    %226 = arith.select %220, %218, %225 : vector<16x32xi1>, vector<16x32xf32>
    %c0_61 = arith.constant 0 : index
    %c0_62 = arith.constant 0 : index
    %227 = vector.load %arg6[%c0_61, %c0_62] : memref<32x40xf32, #tpu.memory_space<vmem>>, vector<32x40xf32>
    %c0_63 = arith.constant 0 : index
    %c0_64 = arith.constant 0 : index
    %228 = vector.load %arg7[%c0_63, %c0_64] : memref<1x32xf32, #tpu.memory_space<vmem>>, vector<1x32xf32>
    %cst_65 = arith.constant dense<0.000000e+00> : vector<16x40xf32>
    %229 = tpu.matmul %226, %227, %cst_65 {dimension_numbers = #tpu.dot_dimension_numbers<[1], [0], [0], [1], [0, 0, 1, 1], [], []>} : vector<16x32xf32>, vector<32x40xf32>, vector<16x40xf32> -> vector<16x40xf32>
    %230 = vector.extract_strided_slice %229 {offsets = [0, 0], sizes = [16, 32], strides = [1, 1]} : vector<16x40xf32> to vector<16x32xf32>
    %231 = vector.extract_strided_slice %229 {offsets = [0, 32], sizes = [16, 4], strides = [1, 1]} : vector<16x40xf32> to vector<16x4xf32>
    %232 = vector.extract_strided_slice %229 {offsets = [0, 36], sizes = [16, 4], strides = [1, 1]} : vector<16x40xf32> to vector<16x4xf32>
    %233 = tpu.transpose %231, [1, 0] : vector<16x4xf32> -> vector<4x16xf32>
    %234 = vector.extract_strided_slice %232 {offsets = [0, 0], sizes = [16, 1], strides = [1, 1]} : vector<16x4xf32> to vector<16x1xf32>
    %235 = vector.extract_strided_slice %233 {offsets = [0, 0], sizes = [1, 16], strides = [1, 1]} : vector<4x16xf32> to vector<1x16xf32>
    %236 = vector.broadcast %234 : vector<16x1xf32> to vector<16x16xf32>
    %237 = vector.broadcast %235 : vector<1x16xf32> to vector<16x16xf32>
    %238 = arith.addf %236, %237 : vector<16x16xf32>
    %cst_66 = arith.constant 0.000000e+00 : f32
    %239 = vector.broadcast %cst_66 : f32 to vector<16x16xf32>
    %240 = arith.cmpf ogt, %238, %239 : vector<16x16xf32>
    %cst_67 = arith.constant 2.000000e-01 : f32
    %241 = vector.broadcast %cst_67 : f32 to vector<16x16xf32>
    %242 = arith.mulf %241, %238 : vector<16x16xf32>
    %243 = arith.select %240, %238, %242 : vector<16x16xi1>, vector<16x16xf32>
    %244 = arith.addf %243, %5 : vector<16x16xf32>
    %cst_68 = arith.constant dense<0xFF800000> : vector<16xf32>
    %245 = vector.multi_reduction <maximumf>, %244, %cst_68 [1] : vector<16x16xf32> to vector<16xf32>
    %246 = vector.shape_cast %245 : vector<16xf32> to vector<16x1xf32>
    %247 = vector.broadcast %246 : vector<16x1xf32> to vector<16x16xf32>
    %248 = arith.subf %244, %247 : vector<16x16xf32>
    %249 = math.exp %248 : vector<16x16xf32>
    %cst_69 = arith.constant dense<0.000000e+00> : vector<16xf32>
    %250 = vector.multi_reduction <add>, %249, %cst_69 [1] : vector<16x16xf32> to vector<16xf32>
    %251 = vector.shape_cast %250 : vector<16xf32> to vector<16x1xf32>
    %252 = tpu.reciprocal %251 {approx = true} : vector<16x1xf32> -> vector<16x1xf32>
    %253 = vector.broadcast %252 : vector<16x1xf32> to vector<16x16xf32>
    %254 = arith.mulf %249, %253 : vector<16x16xf32>
    %255 = vector.extract_strided_slice %230 {offsets = [0, 0], sizes = [16, 8], strides = [1, 1]} : vector<16x32xf32> to vector<16x8xf32>
    %cst_70 = arith.constant dense<0.000000e+00> : vector<16x8xf32>
    %256 = tpu.matmul %254, %255, %cst_70 {dimension_numbers = #tpu.dot_dimension_numbers<[1], [0], [0], [1], [0, 0, 1, 1], [], []>} : vector<16x16xf32>, vector<16x8xf32>, vector<16x8xf32> -> vector<16x8xf32>
    %257 = vector.extract_strided_slice %232 {offsets = [0, 1], sizes = [16, 1], strides = [1, 1]} : vector<16x4xf32> to vector<16x1xf32>
    %258 = vector.extract_strided_slice %233 {offsets = [1, 0], sizes = [1, 16], strides = [1, 1]} : vector<4x16xf32> to vector<1x16xf32>
    %259 = vector.broadcast %257 : vector<16x1xf32> to vector<16x16xf32>
    %260 = vector.broadcast %258 : vector<1x16xf32> to vector<16x16xf32>
    %261 = arith.addf %259, %260 : vector<16x16xf32>
    %cst_71 = arith.constant 0.000000e+00 : f32
    %262 = vector.broadcast %cst_71 : f32 to vector<16x16xf32>
    %263 = arith.cmpf ogt, %261, %262 : vector<16x16xf32>
    %cst_72 = arith.constant 2.000000e-01 : f32
    %264 = vector.broadcast %cst_72 : f32 to vector<16x16xf32>
    %265 = arith.mulf %264, %261 : vector<16x16xf32>
    %266 = arith.select %263, %261, %265 : vector<16x16xi1>, vector<16x16xf32>
    %267 = arith.addf %266, %5 : vector<16x16xf32>
    %cst_73 = arith.constant dense<0xFF800000> : vector<16xf32>
    %268 = vector.multi_reduction <maximumf>, %267, %cst_73 [1] : vector<16x16xf32> to vector<16xf32>
    %269 = vector.shape_cast %268 : vector<16xf32> to vector<16x1xf32>
    %270 = vector.broadcast %269 : vector<16x1xf32> to vector<16x16xf32>
    %271 = arith.subf %267, %270 : vector<16x16xf32>
    %272 = math.exp %271 : vector<16x16xf32>
    %cst_74 = arith.constant dense<0.000000e+00> : vector<16xf32>
    %273 = vector.multi_reduction <add>, %272, %cst_74 [1] : vector<16x16xf32> to vector<16xf32>
    %274 = vector.shape_cast %273 : vector<16xf32> to vector<16x1xf32>
    %275 = tpu.reciprocal %274 {approx = true} : vector<16x1xf32> -> vector<16x1xf32>
    %276 = vector.broadcast %275 : vector<16x1xf32> to vector<16x16xf32>
    %277 = arith.mulf %272, %276 : vector<16x16xf32>
    %278 = vector.extract_strided_slice %230 {offsets = [0, 8], sizes = [16, 8], strides = [1, 1]} : vector<16x32xf32> to vector<16x8xf32>
    %cst_75 = arith.constant dense<0.000000e+00> : vector<16x8xf32>
    %279 = tpu.matmul %277, %278, %cst_75 {dimension_numbers = #tpu.dot_dimension_numbers<[1], [0], [0], [1], [0, 0, 1, 1], [], []>} : vector<16x16xf32>, vector<16x8xf32>, vector<16x8xf32> -> vector<16x8xf32>
    %280 = vector.extract_strided_slice %232 {offsets = [0, 2], sizes = [16, 1], strides = [1, 1]} : vector<16x4xf32> to vector<16x1xf32>
    %281 = vector.extract_strided_slice %233 {offsets = [2, 0], sizes = [1, 16], strides = [1, 1]} : vector<4x16xf32> to vector<1x16xf32>
    %282 = vector.broadcast %280 : vector<16x1xf32> to vector<16x16xf32>
    %283 = vector.broadcast %281 : vector<1x16xf32> to vector<16x16xf32>
    %284 = arith.addf %282, %283 : vector<16x16xf32>
    %cst_76 = arith.constant 0.000000e+00 : f32
    %285 = vector.broadcast %cst_76 : f32 to vector<16x16xf32>
    %286 = arith.cmpf ogt, %284, %285 : vector<16x16xf32>
    %cst_77 = arith.constant 2.000000e-01 : f32
    %287 = vector.broadcast %cst_77 : f32 to vector<16x16xf32>
    %288 = arith.mulf %287, %284 : vector<16x16xf32>
    %289 = arith.select %286, %284, %288 : vector<16x16xi1>, vector<16x16xf32>
    %290 = arith.addf %289, %5 : vector<16x16xf32>
    %cst_78 = arith.constant dense<0xFF800000> : vector<16xf32>
    %291 = vector.multi_reduction <maximumf>, %290, %cst_78 [1] : vector<16x16xf32> to vector<16xf32>
    %292 = vector.shape_cast %291 : vector<16xf32> to vector<16x1xf32>
    %293 = vector.broadcast %292 : vector<16x1xf32> to vector<16x16xf32>
    %294 = arith.subf %290, %293 : vector<16x16xf32>
    %295 = math.exp %294 : vector<16x16xf32>
    %cst_79 = arith.constant dense<0.000000e+00> : vector<16xf32>
    %296 = vector.multi_reduction <add>, %295, %cst_79 [1] : vector<16x16xf32> to vector<16xf32>
    %297 = vector.shape_cast %296 : vector<16xf32> to vector<16x1xf32>
    %298 = tpu.reciprocal %297 {approx = true} : vector<16x1xf32> -> vector<16x1xf32>
    %299 = vector.broadcast %298 : vector<16x1xf32> to vector<16x16xf32>
    %300 = arith.mulf %295, %299 : vector<16x16xf32>
    %301 = vector.extract_strided_slice %230 {offsets = [0, 16], sizes = [16, 8], strides = [1, 1]} : vector<16x32xf32> to vector<16x8xf32>
    %cst_80 = arith.constant dense<0.000000e+00> : vector<16x8xf32>
    %302 = tpu.matmul %300, %301, %cst_80 {dimension_numbers = #tpu.dot_dimension_numbers<[1], [0], [0], [1], [0, 0, 1, 1], [], []>} : vector<16x16xf32>, vector<16x8xf32>, vector<16x8xf32> -> vector<16x8xf32>
    %303 = vector.extract_strided_slice %232 {offsets = [0, 3], sizes = [16, 1], strides = [1, 1]} : vector<16x4xf32> to vector<16x1xf32>
    %304 = vector.extract_strided_slice %233 {offsets = [3, 0], sizes = [1, 16], strides = [1, 1]} : vector<4x16xf32> to vector<1x16xf32>
    %305 = vector.broadcast %303 : vector<16x1xf32> to vector<16x16xf32>
    %306 = vector.broadcast %304 : vector<1x16xf32> to vector<16x16xf32>
    %307 = arith.addf %305, %306 : vector<16x16xf32>
    %cst_81 = arith.constant 0.000000e+00 : f32
    %308 = vector.broadcast %cst_81 : f32 to vector<16x16xf32>
    %309 = arith.cmpf ogt, %307, %308 : vector<16x16xf32>
    %cst_82 = arith.constant 2.000000e-01 : f32
    %310 = vector.broadcast %cst_82 : f32 to vector<16x16xf32>
    %311 = arith.mulf %310, %307 : vector<16x16xf32>
    %312 = arith.select %309, %307, %311 : vector<16x16xi1>, vector<16x16xf32>
    %313 = arith.addf %312, %5 : vector<16x16xf32>
    %cst_83 = arith.constant dense<0xFF800000> : vector<16xf32>
    %314 = vector.multi_reduction <maximumf>, %313, %cst_83 [1] : vector<16x16xf32> to vector<16xf32>
    %315 = vector.shape_cast %314 : vector<16xf32> to vector<16x1xf32>
    %316 = vector.broadcast %315 : vector<16x1xf32> to vector<16x16xf32>
    %317 = arith.subf %313, %316 : vector<16x16xf32>
    %318 = math.exp %317 : vector<16x16xf32>
    %cst_84 = arith.constant dense<0.000000e+00> : vector<16xf32>
    %319 = vector.multi_reduction <add>, %318, %cst_84 [1] : vector<16x16xf32> to vector<16xf32>
    %320 = vector.shape_cast %319 : vector<16xf32> to vector<16x1xf32>
    %321 = tpu.reciprocal %320 {approx = true} : vector<16x1xf32> -> vector<16x1xf32>
    %322 = vector.broadcast %321 : vector<16x1xf32> to vector<16x16xf32>
    %323 = arith.mulf %318, %322 : vector<16x16xf32>
    %324 = vector.extract_strided_slice %230 {offsets = [0, 24], sizes = [16, 8], strides = [1, 1]} : vector<16x32xf32> to vector<16x8xf32>
    %cst_85 = arith.constant dense<0.000000e+00> : vector<16x8xf32>
    %325 = tpu.matmul %323, %324, %cst_85 {dimension_numbers = #tpu.dot_dimension_numbers<[1], [0], [0], [1], [0, 0, 1, 1], [], []>} : vector<16x16xf32>, vector<16x8xf32>, vector<16x8xf32> -> vector<16x8xf32>
    %326 = tpu.concatenate %256, %279, %302, %325 in 1 : vector<16x8xf32>, vector<16x8xf32>, vector<16x8xf32>, vector<16x8xf32> -> vector<16x32xf32>
    %327 = vector.broadcast %228 : vector<1x32xf32> to vector<16x32xf32>
    %328 = arith.addf %326, %327 : vector<16x32xf32>
    %cst_86 = arith.constant 0.000000e+00 : f32
    %329 = vector.broadcast %cst_86 : f32 to vector<16x32xf32>
    %330 = arith.cmpf ogt, %328, %329 : vector<16x32xf32>
    %cst_87 = arith.constant 0.000000e+00 : f32
    %331 = vector.broadcast %cst_87 : f32 to vector<16x32xf32>
    %332 = arith.minimumf %328, %331 : vector<16x32xf32>
    %333 = math.exp %332 : vector<16x32xf32>
    %cst_88 = arith.constant 1.000000e+00 : f32
    %334 = vector.broadcast %cst_88 : f32 to vector<16x32xf32>
    %335 = arith.subf %333, %334 : vector<16x32xf32>
    %336 = arith.select %330, %328, %335 : vector<16x32xi1>, vector<16x32xf32>
    %c0_89 = arith.constant 0 : index
    %c0_90 = arith.constant 0 : index
    %337 = vector.load %arg8[%c0_89, %c0_90] : memref<32x12xf32, #tpu.memory_space<vmem>>, vector<32x12xf32>
    %c0_91 = arith.constant 0 : index
    %c0_92 = arith.constant 0 : index
    %338 = vector.load %arg9[%c0_91, %c0_92] : memref<1x4xf32, #tpu.memory_space<vmem>>, vector<1x4xf32>
    %cst_93 = arith.constant dense<0.000000e+00> : vector<16x12xf32>
    %339 = tpu.matmul %336, %337, %cst_93 {dimension_numbers = #tpu.dot_dimension_numbers<[1], [0], [0], [1], [0, 0, 1, 1], [], []>} : vector<16x32xf32>, vector<32x12xf32>, vector<16x12xf32> -> vector<16x12xf32>
    %340 = vector.extract_strided_slice %339 {offsets = [0, 0], sizes = [16, 8], strides = [1, 1]} : vector<16x12xf32> to vector<16x8xf32>
    %341 = vector.extract_strided_slice %339 {offsets = [0, 8], sizes = [16, 2], strides = [1, 1]} : vector<16x12xf32> to vector<16x2xf32>
    %342 = vector.extract_strided_slice %339 {offsets = [0, 10], sizes = [16, 2], strides = [1, 1]} : vector<16x12xf32> to vector<16x2xf32>
    %343 = tpu.transpose %341, [1, 0] : vector<16x2xf32> -> vector<2x16xf32>
    %344 = vector.extract_strided_slice %342 {offsets = [0, 0], sizes = [16, 1], strides = [1, 1]} : vector<16x2xf32> to vector<16x1xf32>
    %345 = vector.extract_strided_slice %343 {offsets = [0, 0], sizes = [1, 16], strides = [1, 1]} : vector<2x16xf32> to vector<1x16xf32>
    %346 = vector.broadcast %344 : vector<16x1xf32> to vector<16x16xf32>
    %347 = vector.broadcast %345 : vector<1x16xf32> to vector<16x16xf32>
    %348 = arith.addf %346, %347 : vector<16x16xf32>
    %cst_94 = arith.constant 0.000000e+00 : f32
    %349 = vector.broadcast %cst_94 : f32 to vector<16x16xf32>
    %350 = arith.cmpf ogt, %348, %349 : vector<16x16xf32>
    %cst_95 = arith.constant 2.000000e-01 : f32
    %351 = vector.broadcast %cst_95 : f32 to vector<16x16xf32>
    %352 = arith.mulf %351, %348 : vector<16x16xf32>
    %353 = arith.select %350, %348, %352 : vector<16x16xi1>, vector<16x16xf32>
    %354 = arith.addf %353, %5 : vector<16x16xf32>
    %cst_96 = arith.constant dense<0xFF800000> : vector<16xf32>
    %355 = vector.multi_reduction <maximumf>, %354, %cst_96 [1] : vector<16x16xf32> to vector<16xf32>
    %356 = vector.shape_cast %355 : vector<16xf32> to vector<16x1xf32>
    %357 = vector.broadcast %356 : vector<16x1xf32> to vector<16x16xf32>
    %358 = arith.subf %354, %357 : vector<16x16xf32>
    %359 = math.exp %358 : vector<16x16xf32>
    %cst_97 = arith.constant dense<0.000000e+00> : vector<16xf32>
    %360 = vector.multi_reduction <add>, %359, %cst_97 [1] : vector<16x16xf32> to vector<16xf32>
    %361 = vector.shape_cast %360 : vector<16xf32> to vector<16x1xf32>
    %362 = tpu.reciprocal %361 {approx = true} : vector<16x1xf32> -> vector<16x1xf32>
    %363 = vector.broadcast %362 : vector<16x1xf32> to vector<16x16xf32>
    %364 = arith.mulf %359, %363 : vector<16x16xf32>
    %365 = vector.extract_strided_slice %340 {offsets = [0, 0], sizes = [16, 4], strides = [1, 1]} : vector<16x8xf32> to vector<16x4xf32>
    %cst_98 = arith.constant dense<0.000000e+00> : vector<16x4xf32>
    %366 = tpu.matmul %364, %365, %cst_98 {dimension_numbers = #tpu.dot_dimension_numbers<[1], [0], [0], [1], [0, 0, 1, 1], [], []>} : vector<16x16xf32>, vector<16x4xf32>, vector<16x4xf32> -> vector<16x4xf32>
    %367 = vector.extract_strided_slice %342 {offsets = [0, 1], sizes = [16, 1], strides = [1, 1]} : vector<16x2xf32> to vector<16x1xf32>
    %368 = vector.extract_strided_slice %343 {offsets = [1, 0], sizes = [1, 16], strides = [1, 1]} : vector<2x16xf32> to vector<1x16xf32>
    %369 = vector.broadcast %367 : vector<16x1xf32> to vector<16x16xf32>
    %370 = vector.broadcast %368 : vector<1x16xf32> to vector<16x16xf32>
    %371 = arith.addf %369, %370 : vector<16x16xf32>
    %cst_99 = arith.constant 0.000000e+00 : f32
    %372 = vector.broadcast %cst_99 : f32 to vector<16x16xf32>
    %373 = arith.cmpf ogt, %371, %372 : vector<16x16xf32>
    %cst_100 = arith.constant 2.000000e-01 : f32
    %374 = vector.broadcast %cst_100 : f32 to vector<16x16xf32>
    %375 = arith.mulf %374, %371 : vector<16x16xf32>
    %376 = arith.select %373, %371, %375 : vector<16x16xi1>, vector<16x16xf32>
    %377 = arith.addf %376, %5 : vector<16x16xf32>
    %cst_101 = arith.constant dense<0xFF800000> : vector<16xf32>
    %378 = vector.multi_reduction <maximumf>, %377, %cst_101 [1] : vector<16x16xf32> to vector<16xf32>
    %379 = vector.shape_cast %378 : vector<16xf32> to vector<16x1xf32>
    %380 = vector.broadcast %379 : vector<16x1xf32> to vector<16x16xf32>
    %381 = arith.subf %377, %380 : vector<16x16xf32>
    %382 = math.exp %381 : vector<16x16xf32>
    %cst_102 = arith.constant dense<0.000000e+00> : vector<16xf32>
    %383 = vector.multi_reduction <add>, %382, %cst_102 [1] : vector<16x16xf32> to vector<16xf32>
    %384 = vector.shape_cast %383 : vector<16xf32> to vector<16x1xf32>
    %385 = tpu.reciprocal %384 {approx = true} : vector<16x1xf32> -> vector<16x1xf32>
    %386 = vector.broadcast %385 : vector<16x1xf32> to vector<16x16xf32>
    %387 = arith.mulf %382, %386 : vector<16x16xf32>
    %388 = vector.extract_strided_slice %340 {offsets = [0, 4], sizes = [16, 4], strides = [1, 1]} : vector<16x8xf32> to vector<16x4xf32>
    %cst_103 = arith.constant dense<0.000000e+00> : vector<16x4xf32>
    %389 = tpu.matmul %387, %388, %cst_103 {dimension_numbers = #tpu.dot_dimension_numbers<[1], [0], [0], [1], [0, 0, 1, 1], [], []>} : vector<16x16xf32>, vector<16x4xf32>, vector<16x4xf32> -> vector<16x4xf32>
    %390 = arith.addf %366, %389 : vector<16x4xf32>
    %cst_104 = arith.constant 5.000000e-01 : f32
    %391 = vector.broadcast %cst_104 : f32 to vector<16x4xf32>
    %392 = arith.mulf %390, %391 : vector<16x4xf32>
    %393 = vector.broadcast %338 : vector<1x4xf32> to vector<16x4xf32>
    %394 = arith.addf %392, %393 : vector<16x4xf32>
    %c0_105 = arith.constant 0 : index
    %c0_106 = arith.constant 0 : index
    %395 = vector.load %arg10[%c0_105, %c0_106] : memref<16x4xf32, #tpu.memory_space<vmem>>, vector<16x4xf32>
    tpu.vector_store %arg10[%c0_105, %c0_106], %394 {strides = array<i32>} : memref<16x4xf32, #tpu.memory_space<vmem>>, vector<16x4xf32>,
    return
  }
}

</mosaic_0001>

<bundles_post_ra>
// kernel: tpu_custom_call.1
= control target key start
LH: loop header
LB: loop body
LE: loop exit
PB: predicated region body
PF: predicated region fallthrough
CT: control target
= control target key end

     0   :  { %15 = vsyncpa [#allocation3], 0  ;;  %s3677_s0 = inlined_call_operand.hbm [shape: f32[16,32], index: 0, kind: input, shape index: {}]   ;;  %s3678_s1 = inlined_call_operand.hbm [shape: f32[16,16], index: 1, kind: input, shape index: {}]   ;;  %s3679_s2 = inlined_call_operand.vmem [shape: f32[32,40], index: 2, kind: input, shape index: {}]   ;;  %s3680_s3 = inlined_call_operand.vmem [shape: f32[1,32], index: 3, kind: input, shape index: {}]   ;;  %s3681_s4 = inlined_call_operand.hbm [shape: f32[32,40], index: 4, kind: input, shape index: {}]   ;;  %s3682_s5 = inlined_call_operand.vmem [shape: f32[1,32], index: 5, kind: input, shape index: {}]   ;;  %s3683_s6 = inlined_call_operand.vmem [shape: f32[32,40], index: 6, kind: input, shape index: {}]   ;;  %s3684_s7 = inlined_call_operand.vmem [shape: f32[1,32], index: 7, kind: input, shape index: {}]   ;;  %s3685_s8 = inlined_call_operand.vmem [shape: f32[32,12], index: 8, kind: input, shape index: {}]   ;;  %s3686_s9 = inlined_call_operand.vmem [shape: f32[1,4], index: 9, kind: input, shape index: {}]   ;;  %s3687_s10 = inlined_call_operand.vmem [shape: f32[16,4], index: 10, kind: output, shape index: {}]  }
   0x1   :  { %16 = vsyncpa [#allocation5], 0  ;;  %s3219_s13 = smov [#allocation4]   ;;  %s3220_s15 = smov [#allocation2]  }
   0x2   :  { %s34_s14 = sshll.u32 %s3219_s13, 4  ;;  %s22_s16 = sshll.u32 %s3220_s15, 4  ;;  %s35_s14 = int_to_ptr.vmem [resolvable:$true] %s34_s14  ;;  %s3293_s16 = int_to_ptr.vmem [resolvable:$true] %s22_s16 }
   0x3   :  { %s3149_s19 = scalar_lea.hbm %s3678_s1, 256 }
   0x4   :  { %p3150_p0 = scmp.ne.s32.totalorder %s3678_s1, %s3149_s19  ;;  %p3153_p1 = scmp.lt.u32.totalorder %s3149_s19, %s3678_s1 }
   0x6   :  { %p3155_p2 = pnand %p3153_p1, %p3150_p0 }
   0x8   :  { %3158 = shalt.err (!%p3155_p2)
}
   0x9   :  { %s3159_s24 = scalar_lea.vmem %s35_s14, 256  ;;  %p3164_p4 = scmp.lt.s32.totalorder %s35_s14, %s35_s14 }
   0xa   :  { %p3160_p3 = scmp.ne.s32.totalorder %s35_s14, %s3159_s24  ;;  %p3165_p5 = scmp.lt.s32.totalorder %s3159_s24, %s3159_s24 }
   0xc   :  { %p3166_p6 = por %p3165_p5, %p3164_p4 }
   0xe   :  { %p3167_p7 = pnand %p3166_p6, %p3160_p3 }
  0x10   :  { %3170 = shalt.err (!%p3167_p7)
}
  0x11   :  { %s3221_s25 = smov 128   ;;  %s3222_s26 = smov 8  }
  0x12   :  { %40 = dma.hbm_to_vmem [thread:$0]  %s3678_s1, 256, %s35_s14, [#allocation5], %s3221_s25, %s3221_s25, %s3222_s26  }
  0x13   :  { %s3171_s11 = scalar_lea.hbm %s3677_s0, 256 }
  0x14   :  { %p3172_p8 = scmp.ne.s32.totalorder %s3677_s0, %s3171_s11  ;;  %p3175_p9 = scmp.lt.u32.totalorder %s3171_s11, %s3677_s0 }
  0x16   :  { %p3177_p10 = pnand %p3175_p9, %p3172_p8 }
  0x18   :  { %3180 = shalt.err (!%p3177_p10)
}
  0x19   :  { %s3181_s18 = scalar_lea.vmem %s3293_s16, 256  ;;  %p3186_p12 = scmp.lt.s32.totalorder %s3293_s16, %s3293_s16 }
  0x1a   :  { %p3182_p11 = scmp.ne.s32.totalorder %s3293_s16, %s3181_s18  ;;  %p3187_p13 = scmp.lt.s32.totalorder %s3181_s18, %s3181_s18 }
  0x1c   :  { %p3188_p0 = por %p3187_p13, %p3186_p12 }
  0x1e   :  { %p3189_p1 = pnand %p3188_p0, %p3182_p11 }
  0x20   :  { %3192 = shalt.err (!%p3189_p1)
}
  0x21   :  { %28 = dma.hbm_to_vmem [thread:$0]  %s3677_s0, 256, %s3293_s16, [#allocation3], %s3221_s25, %s3221_s25, %s3222_s26  }
  0x22   :  { %s3223_s19 = smov [#allocation6]   ;;  %s3193_s23 = scalar_lea.hbm %s3681_s4, 512 }
  0x23   :  { %s50_s20 = sshll.u32 %s3223_s19, 4  ;;  %p3194_p2 = scmp.ne.s32.totalorder %s3681_s4, %s3193_s23  ;;  %s51_s20 = int_to_ptr.vmem [resolvable:$true] %s50_s20 }
  0x24   :  { %p3197_p3 = scmp.lt.u32.totalorder %s3193_s23, %s3681_s4 }
  0x26   :  { %p3199_p4 = pnand %p3197_p3, %p3194_p2 }
  0x28   :  { %3202 = shalt.err (!%p3199_p4)
}
  0x29   :  { %s3203_s30 = scalar_lea.vmem %s51_s20, 512  ;;  %p3208_p6 = scmp.lt.s32.totalorder %s51_s20, %s51_s20 }
  0x2a   :  { %p3204_p5 = scmp.ne.s32.totalorder %s51_s20, %s3203_s30  ;;  %p3209_p7 = scmp.lt.s32.totalorder %s3203_s30, %s3203_s30 }
  0x2c   :  { %p3210_p8 = por %p3209_p7, %p3208_p6 }
  0x2e   :  { %p3211_p9 = pnand %p3210_p8, %p3204_p5 }
  0x30   :  { %3214 = shalt.err (!%p3211_p9)
}
  0x31   :  { %56 = dma.hbm_to_vmem [thread:$0]  %s3681_s4, 512, %s51_s20, [#allocation5], %s3221_s25, %s3221_s25, %s3222_s26  }
  0x32   :  { %3215 = dma.done.wait [#allocation3], 256  }
  0x33   :  { %3216 = vsyncadd [#allocation3], 4294967040 }
  0x34   :  { %3217 = dma.done.wait [#allocation5], 768  }
  0x35   :  { %3218 = vsyncadd [#allocation5], 4294966528  ;;  %v3224_v0 = vmov 36   ;;  %vm89_vm0 = vcmask 261120   ;;  %v84_v1 = vld [vmem:[%s3679_s2] sm:$0xff]  ;;  %v85_v2 = vld [vmem:[%s3679_s2 + $0x8] sm:$0xff]  ;;  %v219_v19 = vlaneseq }
  0x36   :  { %2949 = vset.pattern.permute.xlu1 %v3224_v0  ;;  %v86_v3 = vld [vmem:[%s3679_s2 + $0x10] sm:$0xff]  ;;  %v2839_v4 = vpack.c.bf16 %v85_v2, %v84_v1  ;;  %v87_v5 = vld [vmem:[%s3679_s2 + $0x18] sm:$0xff]  ;;  %v82_v6 = vld [vmem:[#allocation2] sm:$0xff]  ;;  %v3225_v9 = vmov 38   ;;  %s3226_s1 = smov 96   ;;  %v3227_v14 = vmov 37  }
  0x37   :  { %v2843_v7 = vpack.c.bf16 %v87_v5, %v86_v3  ;;  %2705 = vmatprep.mubr.msk.f32.mxu0 %vm89_vm0, %v82_v6  ;;  %v83_v8 = vld [vmem:[#allocation2 + $0x8] sm:$0xff]  ;;  %2951 = vset.pattern.permute.xlu0 %v3225_v9  ;;  %v3228_v15 = vmov 39   ;;  %v220_v21 = vshrl.u32 %v219_v19, 7  ;;  %v77_v27 = vld [vmem:[#allocation4 + $0x8] sm:$0xff]  ;;  %v76_v28 = vld [vmem:[#allocation4] sm:$0xff]  ;;  %vm233_vm5 = vcmask 130048  }
  0x38   :  { %2840 = vmatprep.subr.bf16.mxu0 %v2839_v4  ;;  %vm79_vm1 = vcmp.gt.f32.partialorder %v77_v27, 0.0  ;;  %vm78_vm2 = vcmp.gt.f32.partialorder %v76_v28, 0.0  ;;  %v3229_v38 = vmov -1e+30   ;;  %s3230_s2 = smov 120   ;;  %s3231_s14 = smov 104  }
  0x39   :  { %2842 = vmatpush3.bf16.msra.mxu0 %v2839_v4  ;;  %v3372_v24 = vsub.s32 0, %v220_v21  ;;  %v3374_v25 = vsub.s32 1, %v220_v21  ;;  %v3376_v26 = vsub.s32 2, %v220_v21  ;;  %v3381_v39 = vsel %vm79_vm1, 0.0, %v3229_v38  ;;  %s3232_s19 = smov 112   ;;  %s3233_s20 = smov 16  }
  0x3a   :  { %2844 = vmatprep.subr.bf16.mxu0 %v2843_v7  ;;  %v3383_v40 = vsel %vm78_vm2, 0.0, %v3229_v38  ;;  %v3385_v44 = vsub.s32 3, %v220_v21  ;;  %s3234_s21 = smov 24   ;;  %vm754_vm12 = vcmask 64512   ;;  %vm759_vm13 = vcmask 195584  }
  0x3d   :  { %2846 = vmatpush3.bf16.msra.mxu0 %v2843_v7 }
  0x40   :  { %2706 = vmatmul.mubr.msk.f32.vlgmr.msra.gmra.mrb[0].mxu0 %vm89_vm0, %v83_v8 }
 0x113   :  { %v2707_v10 = vpop.f32.mrb[0].mxu0 }
 0x114   :  { %216 = vperm.xlu1 %2949, %v2707_v10   ;;  %v162_v11 = vpop.f32.mrb[1].mxu0 }
 0x115   :  { %173 = vrot.lane.b32.xlu0 %v162_v11, %s3226_s1  ;;  %v2847_v12 = vpack.c.bf16 %v2707_v10, %v162_v11  ;;  %v3362_v13 = vpack.i.bf16 %v2707_v10, %v162_v11 }
 0x117   :  { %2848 = vmatprep.subr.bf16.mxu1 %v2847_v12 }
 0x118   :  { %2950 = vset.pattern.permute.xlu1 %v3227_v14  ;;  %2850 = vmatpush3.bf16.msra.mxu1 %v2847_v12 }
 0x119   :  { %342 = vperm.xlu1 %2950, %v2707_v10   ;;  %175 = vrot.lane.b32.xlu0 %v2707_v10, %s3226_s1 }
 0x11d   :  { %2952 = vset.pattern.permute.xlu1 %v3224_v0  ;;  %473 = vperm.xlu0 %2951, %v2707_v10  }
 0x11e   :  { %212 = vperm.xlu1 %2952, %v162_v11  }
 0x121   :  { %2953 = vset.pattern.permute.xlu0 %v3227_v14 }
 0x122   :  { %2954 = vset.pattern.permute.xlu1 %v3225_v9  ;;  %338 = vperm.xlu0 %2953, %v162_v11  }
 0x123   :  { %469 = vperm.xlu1 %2954, %v162_v11  }
 0x127   :  { %2955 = vset.pattern.permute.xlu1 %v3228_v15 }
 0x128   :  { %600 = vperm.xlu1 %2955, %v162_v11  }
 0x12c   :  { %604 = vperm.xlu1 %2955, %v2707_v10  }
 0x130   :  { %2972 = vset.pattern.permute.xlu1 %v3227_v14 }
 0x187   :  { %v174_v16 = vpop.permute.xlu0 %173 }
 0x188   :  { %179 = vxpose.xlu0.b32.start [1/2] (short) (narrow) %v174_v16, 8 }
 0x18b   :  { %v176_v17 = vpop.permute.xlu0 %175 }
 0x18c   :  { %180 = vxpose.xlu0.b32.end [2/2] (short) (narrow) %v176_v17, 8 }
 0x193   :  { %v217_v18 = vpop.permute.xlu1 %216 }
 0x198   :  { %v343_v22 = vpop.permute.xlu1 %342 }
 0x19c   :  { %v474_v20 = vpop.permute.xlu0 %473 }
 0x19d   :  { %v213_v29 = vpop.permute.xlu1 %212 }
 0x1a1   :  { %v339_v23 = vpop.permute.xlu0 %338 }
 0x1a2   :  { %v470_v43 = vpop.permute.xlu1 %469 }
 0x1a7   :  { %v601_v60 = vpop.permute.xlu1 %600 }
 0x1ab   :  { %v605_v3 = vpop.permute.xlu1 %604 }
 0x1b5   :  { %2971 = vset.pattern.permute.xlu0 %v3224_v0 }
 0x208   :  { %v195_v30 = vpop.trf.xlu0 }
 0x209   :  { %v222_v31 = vrot.slane %v195_v30, %v3372_v24  ;;  %v348_v32 = vrot.slane %v195_v30, %v3374_v25  ;;  %v479_v33 = vrot.slane %v195_v30, %v3376_v26  ;;  %v610_v56 = vrot.slane %v195_v30, %v3385_v44 }
 0x20b   :  { %v224_v34 = vadd.f32 %v222_v31, %v217_v18  ;;  %v223_v35 = vadd.f32 %v222_v31, %v213_v29  ;;  %v349_v36 = vadd.f32 %v348_v32, %v339_v23  ;;  %v350_v37 = vadd.f32 %v348_v32, %v343_v22 }
 0x20c   :  { %v480_v49 = vadd.f32 %v479_v33, %v470_v43  ;;  %v481_v59 = vadd.f32 %v479_v33, %v474_v20  ;;  %v611_v2 = vadd.f32 %v610_v56, %v601_v60  ;;  %v612_v8 = vadd.f32 %v610_v56, %v605_v3 }
 0x20d   :  { %vm226_vm3 = vcmp.gt.f32.partialorder %v224_v34, 0.0  ;;  %v228_v41 = vmul.f32 0.2, %v224_v34  ;;  %vm225_vm4 = vcmp.gt.f32.partialorder %v223_v35, 0.0  ;;  %v227_v42 = vmul.f32 0.2, %v223_v35 }
 0x20e   :  { %vm351_vm6 = vcmp.gt.f32.partialorder %v349_v36, 0.0  ;;  %v353_v45 = vmul.f32 0.2, %v349_v36  ;;  %v354_v48 = vmul.f32 0.2, %v350_v37  ;;  %vm352_vm7 = vcmp.gt.f32.partialorder %v350_v37, 0.0 }
 0x20f   :  { %v230_v46 = vsel %vm226_vm3, %v224_v34, %v228_v41  ;;  %v229_v47 = vsel %vm225_vm4, %v223_v35, %v227_v42  ;;  %v484_v58 = vmul.f32 0.2, %v480_v49  ;;  %vm482_vm8 = vcmp.gt.f32.partialorder %v480_v49, 0.0 }
 0x210   :  { %v232_v50 = vadd.f32 %v230_v46, %v3381_v39  ;;  %v231_v51 = vadd.f32 %v229_v47, %v3383_v40  ;;  %v355_v52 = vsel %vm351_vm6, %v349_v36, %v353_v45  ;;  %v356_v57 = vsel %vm352_vm7, %v350_v37, %v354_v48 }
 0x211   :  { %v357_v55 = vadd.f32 %v355_v52, %v3383_v40  ;;  %v358_v62 = vadd.f32 %v356_v57, %v3381_v39  ;;  %v486_v63 = vsel %vm482_vm8, %v480_v49, %v484_v58  ;;  %v485_v1 = vmul.f32 0.2, %v481_v59 }
 0x212   :  { %v237_v53 = vsel %vm233_vm5, %v232_v50, -inf  ;;  %v234_v54 = vsel %vm233_vm5, %v231_v51, -inf  ;;  %vm483_vm9 = vcmp.gt.f32.partialorder %v481_v59, 0.0  ;;  %v488_v5 = vadd.f32 %v486_v63, %v3383_v40 }
 0x213   :  { %238 = vmax.xlane.f32.xlu0 %v237_v53  ;;  %235 = vmax.xlane.f32.xlu1 %v234_v54  ;;  %v359_v61 = vsel %vm233_vm5, %v357_v55, -inf  ;;  %v362_v4 = vsel %vm233_vm5, %v358_v62, -inf  ;;  %v487_v6 = vsel %vm483_vm9, %v481_v59, %v485_v1  ;;  %v615_v7 = vmul.f32 0.2, %v611_v2 }
 0x214   :  { %vm613_vm10 = vcmp.gt.f32.partialorder %v611_v2, 0.0  ;;  %v490_v10 = vsel %vm233_vm5, %v488_v5, -inf  ;;  %v489_v11 = vadd.f32 %v487_v6, %v3381_v39  ;;  %v616_v16 = vmul.f32 0.2, %v612_v8 }
 0x215   :  { %v617_v12 = vsel %vm613_vm10, %v611_v2, %v615_v7  ;;  %vm614_vm11 = vcmp.gt.f32.partialorder %v612_v8, 0.0 }
 0x216   :  { %v493_v17 = vsel %vm233_vm5, %v489_v11, -inf  ;;  %v619_v18 = vadd.f32 %v617_v12, %v3383_v40  ;;  %v618_v19 = vsel %vm614_vm11, %v612_v8, %v616_v16 }
 0x217   :  { %360 = vmax.xlane.f32.xlu1 %v359_v61  ;;  %v620_v21 = vadd.f32 %v618_v19, %v3381_v39 }
 0x218   :  { %v621_v20 = vsel %vm233_vm5, %v619_v18, -inf }
 0x219   :  { %v624_v22 = vsel %vm233_vm5, %v620_v21, -inf }
 0x21b   :  { %363 = vmax.xlane.f32.xlu1 %v362_v4 }
 0x21f   :  { %491 = vmax.xlane.f32.xlu1 %v490_v10 }
 0x223   :  { %494 = vmax.xlane.f32.xlu1 %v493_v17 }
 0x227   :  { %622 = vmax.xlane.f32.xlu1 %v621_v20 }
 0x22b   :  { %625 = vmax.xlane.f32.xlu1 %v624_v22 }
 0x23c   :  { %2957 = vrot.lane.b32.xlu1 %v3362_v13, %s3230_s2 }
 0x2a0   :  { %v239_v23 = vpop.xlane.xlu0 %238  ;;  %v236_v27 = vpop.xlane.xlu1 %235 }
 0x2a1   :  { %v241_v28 = vsub.f32 %v232_v50, %v239_v23  ;;  %v240_v29 = vsub.f32 %v231_v51, %v236_v27 }
 0x2a3   :  { %v242_v30 = vmul.f32 1.442695, %v240_v29  ;;  %v244_v31 = vmul.f32 1.442695, %v241_v28 }
 0x2a4   :  { %v361_v32 = vpop.xlane.xlu1 %360 }
 0x2a5   :  { %v365_v33 = vsub.f32 %v357_v55, %v361_v32  ;;  %3025 = vpow2.f32 %v242_v30 }
 0x2a6   :  { %3027 = vpow2.f32 %v244_v31 }
 0x2a7   :  { %v367_v34 = vmul.f32 1.442695, %v365_v33 }
 0x2a8   :  { %v364_v35 = vpop.xlane.xlu1 %363 }
 0x2a9   :  { %v366_v36 = vsub.f32 %v358_v62, %v364_v35  ;;  %3029 = vpow2.f32 %v367_v34 }
 0x2ab   :  { %v369_v37 = vmul.f32 1.442695, %v366_v36 }
 0x2ac   :  { %v492_v38 = vpop.xlane.xlu1 %491 }
 0x2ad   :  { %v496_v41 = vsub.f32 %v488_v5, %v492_v38  ;;  %3031 = vpow2.f32 %v369_v37 }
 0x2af   :  { %v3026_v42 = vpop.eup %3025  ;;  %v498_v43 = vmul.f32 1.442695, %v496_v41 }
 0x2b0   :  { %v495_v45 = vpop.xlane.xlu1 %494  ;;  %v246_v47 = vsel %vm233_vm5, %v3026_v42, 0.0  ;;  %v3028_v48 = vpop.eup %3027 }
 0x2b1   :  { %v497_v46 = vsub.f32 %v489_v11, %v495_v45  ;;  %247 = vadd.xlane.f32.xlu1 %v246_v47  ;;  %3033 = vpow2.f32 %v498_v43  ;;  %v249_v52 = vsel %vm233_vm5, %v3028_v48, 0.0 }
 0x2b3   :  { %v500_v49 = vmul.f32 1.442695, %v497_v46  ;;  %v3030_v53 = vpop.eup %3029 }
 0x2b4   :  { %v623_v50 = vpop.xlane.xlu1 %622  ;;  %v371_v57 = vsel %vm233_vm5, %v3030_v53, 0.0 }
 0x2b5   :  { %3035 = vpow2.f32 %v500_v49  ;;  %v627_v51 = vsub.f32 %v619_v18, %v623_v50  ;;  %250 = vadd.xlane.f32.xlu1 %v249_v52 }
 0x2b7   :  { %v629_v54 = vmul.f32 1.442695, %v627_v51  ;;  %v3032_v58 = vpop.eup %3031 }
 0x2b8   :  { %v626_v55 = vpop.xlane.xlu1 %625  ;;  %v374_v63 = vsel %vm233_vm5, %v3032_v58, 0.0 }
 0x2b9   :  { %3037 = vpow2.f32 %v629_v54  ;;  %v628_v56 = vsub.f32 %v620_v21, %v626_v55  ;;  %372 = vadd.xlane.f32.xlu1 %v371_v57 }
 0x2bb   :  { %v631_v59 = vmul.f32 1.442695, %v628_v56  ;;  %v3034_v1 = vpop.eup %3033 }
 0x2bc   :  { %v2958_v60 = vpop.permute.xlu1 %2957  ;;  %v502_v5 = vsel %vm233_vm5, %v3034_v1, 0.0 }
 0x2bd   :  { %3039 = vpow2.f32 %v631_v59  ;;  %v2960_v61 = vunpack.i.h.bf16 %v2958_v60  ;;  %v2959_v62 = vunpack.i.l.bf16 %v2958_v60  ;;  %375 = vadd.xlane.f32.xlu1 %v374_v63  ;;  %v782_v59 = vld [vmem:[#allocation6] sm:$0xff]  ;;  %v783_v60 = vld [vmem:[#allocation6 + $0x8] sm:$0xff]  ;;  %v785_v63 = vld [vmem:[#allocation6 + $0x18] sm:$0xff] }
 0x2bf   :  { %v3410_v2 = vpop.eup %3035  ;;  %v2851_v3 = vpack.c.bf16 %v2960_v61, %v2959_v62  ;;  %v784_v61 = vld [vmem:[#allocation6 + $0x10] sm:$0xff]  ;;  %v2863_v62 = vpack.c.bf16 %v783_v60, %v782_v59 }
 0x2c0   :  { %v505_v4 = vsel %vm233_vm5, %v3410_v2, 0.0 }
 0x2c1   :  { %506 = vadd.xlane.f32.xlu0 %v505_v4  ;;  %2852 = vmatprep.subr.bf16.mxu1 %v2851_v3 }
 0x2c2   :  { %503 = vadd.xlane.f32.xlu1 %v502_v5 }
 0x2c3   :  { %v3038_v6 = vpop.eup %3037 }
 0x2c4   :  { %v633_v7 = vsel %vm233_vm5, %v3038_v6, 0.0 }
 0x2c6   :  { %634 = vadd.xlane.f32.xlu1 %v633_v7 }
 0x2c7   :  { %v3040_v8 = vpop.eup %3039 }
 0x2c8   :  { %v636_v10 = vsel %vm233_vm5, %v3040_v8, 0.0 }
 0x2c9   :  { %637 = vadd.xlane.f32.xlu0 %v636_v10 }
 0x2d7   :  { %2967 = vrot.lane.b32.xlu1 %v3362_v13, %s3231_s14 }
 0x2df   :  { %2962 = vrot.lane.b32.xlu0 %v3362_v13, %s3232_s19 }
 0x33e   :  { %v248_v11 = vpop.xlane.xlu1 %247 }
 0x33f   :  { %3041 = vrcp.f32 %v248_v11 }
 0x342   :  { %v251_v12 = vpop.xlane.xlu1 %250 }
 0x343   :  { %3043 = vrcp.f32 %v251_v12 }
 0x346   :  { %v373_v16 = vpop.xlane.xlu1 %372 }
 0x347   :  { %3045 = vrcp.f32 %v373_v16 }
 0x349   :  { %v3042_v17 = vpop.eup %3041 }
 0x34a   :  { %v376_v18 = vpop.xlane.xlu1 %375  ;;  %v254_v19 = vmul.f32 %v3042_v17, %v3026_v42 }
 0x34b   :  { %3047 = vrcp.f32 %v376_v18 }
 0x34c   :  { %2712 = vmatprep.mubr.msk.f32.mxu1 %vm233_vm5, %v254_v19 }
 0x34d   :  { %v3044_v20 = vpop.eup %3043 }
 0x34e   :  { %v255_v22 = vmul.f32 %v3044_v20, %v3028_v48  ;;  %v507_v23 = vpop.xlane.xlu0 %506 }
 0x34f   :  { %v504_v21 = vpop.xlane.xlu1 %503 }
 0x350   :  { %3049 = vrcp.f32 %v504_v21  ;;  %2713 = vmatmul.mubr.msk.f32.vlgmr.msra.gmra.mrb[0].mxu1 %vm233_vm5, %v255_v22 }
 0x351   :  { %v3046_v13 = vpop.eup %3045  ;;  %2854 = vmatpush3.bf16.msra.mxu1 %v2851_v3  ;;  %3051 = vrcp.f32 %v507_v23 }
 0x352   :  { %v379_v28 = vmul.f32 %v3046_v13, %v3030_v53 }
 0x353   :  { %v635_v27 = vpop.xlane.xlu1 %634 }
 0x354   :  { %3053 = vrcp.f32 %v635_v27  ;;  %2719 = vmatprep.mubr.msk.f32.mxu1 %vm233_vm5, %v379_v28 }
 0x355   :  { %v3048_v29 = vpop.eup %3047 }
 0x356   :  { %v638_v30 = vpop.xlane.xlu0 %637  ;;  %v380_v31 = vmul.f32 %v3048_v29, %v3032_v58 }
 0x357   :  { %3055 = vrcp.f32 %v638_v30  ;;  %v2968_v32 = vpop.permute.xlu1 %2967 }
 0x358   :  { %v2970_v33 = vunpack.i.h.bf16 %v2968_v32  ;;  %v2969_v34 = vunpack.i.l.bf16 %v2968_v32  ;;  %2720 = vmatmul.mubr.msk.f32.vlgmr.msra.gmra.mrb[2].mxu1 %vm233_vm5, %v380_v31 }
 0x35a   :  { %v3050_v35 = vpop.eup %3049  ;;  %v2859_v36 = vpack.c.bf16 %v2970_v33, %v2969_v34  ;;  %v2963_v37 = vpop.permute.xlu0 %2962 }
 0x35b   :  { %v2965_v38 = vunpack.i.h.bf16 %v2963_v37  ;;  %v2964_v41 = vunpack.i.l.bf16 %v2963_v37  ;;  %v510_v42 = vmul.f32 %v3050_v35, %v3034_v1  ;;  %v3052_v43 = vpop.eup %3051  ;;  %v2867_v1 = vpack.c.bf16 %v785_v63, %v784_v61 }
 0x35c   :  { %2860 = vmatprep.subr.bf16.mxu1 %v2859_v36  ;;  %v511_v49 = vmul.f32 %v3052_v43, %v3410_v2 }
 0x35d   :  { %2726 = vmatprep.mubr.msk.f32.mxu0 %vm233_vm5, %v510_v42  ;;  %2862 = vmatpush3.bf16.msra.mxu1 %v2859_v36  ;;  %v2855_v45 = vpack.c.bf16 %v2965_v38, %v2964_v41 }
 0x35e   :  { %v3054_v46 = vpop.eup %3053 }
 0x35f   :  { %2856 = vmatprep.subr.bf16.mxu0 %v2855_v45  ;;  %v641_v47 = vmul.f32 %v3054_v46, %v3038_v6 }
 0x360   :  { %2858 = vmatpush3.bf16.msra.mxu0 %v2855_v45 }
 0x361   :  { %v3056_v48 = vpop.eup %3055  ;;  %2733 = vmatprep.mubr.msk.f32.mxu1 %vm233_vm5, %v641_v47  ;;  %2864 = vmatprep.subr.bf16.mxu0 %v2863_v62 }
 0x362   :  { %v642_v50 = vmul.f32 %v3056_v48, %v3040_v8  ;;  %v2581_v8 = vld [vmem:[%s3680_s3] ss:$0 sm:$0xff] }
 0x363   :  { %2727 = vmatmul.mubr.msk.f32.vlgmr.msra.gmra.mrb[2].mxu0 %vm233_vm5, %v511_v49 }
 0x364   :  { %2734 = vmatmul.mubr.msk.f32.vlgmr.msra.gmra.mrb[4].mxu1 %vm233_vm5, %v642_v50  ;;  %2866 = vmatpush3.bf16.msra.mxu0 %v2863_v62 }
 0x365   :  { %2868 = vmatprep.subr.bf16.mxu0 %v2867_v1 }
 0x368   :  { %2870 = vmatpush3.bf16.msra.mxu0 %v2867_v1 }
 0x423   :  { %v2714_v51 = vpop.f32.mrb[0].mxu1 }
 0x424   :  { %v328_v52 = vpop.f32.mrb[1].mxu1 }
 0x42b   :  { %v2721_v53 = vpop.f32.mrb[2].mxu1 }
 0x42c   :  { %v459_v54 = vpop.f32.mrb[3].mxu1 }
 0x436   :  { %v2728_v55 = vpop.f32.mrb[2].mxu0 }
 0x437   :  { %742 = vrot.lane.b32.xlu0 %v2728_v55, %s3233_s20  ;;  %v590_v56 = vpop.f32.mrb[3].mxu0  ;;  %v2735_v57 = vpop.f32.mrb[4].mxu1 }
 0x438   :  { %740 = vrot.lane.b32.xlu1 %v590_v56, %s3233_s20  ;;  %v721_v58 = vpop.f32.mrb[5].mxu1 }
 0x43b   :  { %734 = vrot.lane.b32.xlu0 %v2721_v53, %s3222_s26 }
 0x43c   :  { %732 = vrot.lane.b32.xlu1 %v459_v54, %s3222_s26 }
 0x43f   :  { %750 = vrot.lane.b32.xlu0 %v2735_v57, %s3234_s21 }
 0x440   :  { %748 = vrot.lane.b32.xlu1 %v721_v58, %s3234_s21 }
 0x4a9   :  { %v743_v2 = vpop.permute.xlu0 %742 }
 0x4aa   :  { %v741_v3 = vpop.permute.xlu1 %740 }
 0x4ad   :  { %v735_v4 = vpop.permute.xlu0 %734 }
 0x4ae   :  { %v756_v5 = vsel %vm754_vm12, %v2714_v51, %v735_v4  ;;  %v733_v6 = vpop.permute.xlu1 %732 }
 0x4af   :  { %v755_v7 = vsel %vm754_vm12, %v328_v52, %v733_v6  ;;  %v758_v10 = vsel %vm233_vm5, %v756_v5, %v743_v2 }
 0x4b0   :  { %v757_v16 = vsel %vm233_vm5, %v755_v7, %v741_v3 }
 0x4b1   :  { %v751_v11 = vpop.permute.xlu0 %750 }
 0x4b2   :  { %v761_v12 = vsel %vm759_vm13, %v758_v10, %v751_v11  ;;  %v749_v17 = vpop.permute.xlu1 %748 }
 0x4b3   :  { %v769_v18 = vadd.f32 %v2581_v8, %v761_v12  ;;  %v760_v19 = vsel %vm759_vm13, %v757_v16, %v749_v17 }
 0x4b4   :  { %v768_v20 = vadd.f32 %v2581_v8, %v760_v19 }
 0x4b5   :  { %v773_v21 = vmin.f32 %v769_v18, 0.0  ;;  %vm771_vm15 = vcmp.gt.f32.partialorder %v769_v18, 0.0 }
 0x4b6   :  { %v772_v22 = vmin.f32 %v768_v20, 0.0  ;;  %vm770_vm14 = vcmp.gt.f32.partialorder %v768_v20, 0.0 }
 0x4b7   :  { %v776_v23 = vmul.f32 1.442695, %v773_v21 }
 0x4b8   :  { %v774_v13 = vmul.f32 1.442695, %v772_v22 }
 0x4b9   :  { %3057 = vpow2.f32 %v776_v23 }
 0x4ba   :  { %3059 = vpow2.f32 %v774_v13 }
 0x4c3   :  { %v3058_v27 = vpop.eup %3057 }
 0x4c4   :  { %v3060_v28 = vpop.eup %3059  ;;  %v2583_v29 = vadd.f32 -1.0, %v3058_v27 }
 0x4c5   :  { %v2582_v30 = vadd.f32 -1.0, %v3060_v28 }
 0x4c6   :  { %v781_v32 = vsel %vm771_vm15, %v769_v18, %v2583_v29 }
 0x4c7   :  { %v780_v31 = vsel %vm770_vm14, %v768_v20, %v2582_v30 }
 0x4c8   :  { %2744 = vmatprep.mubr.msk.f32.mxu0 %vm89_vm0, %v780_v31 }
 0x4c9   :  { %2745 = vmatmul.mubr.msk.f32.vlgmr.msra.gmra.mrb[4].mxu0 %vm89_vm0, %v781_v32 }
 0x59c   :  { %v2746_v33 = vpop.f32.mrb[4].mxu0 }
 0x59d   :  { %1038 = vperm.xlu1 %2972, %v2746_v33   ;;  %872 = vrot.lane.b32.xlu0 %v2746_v33, %s3226_s1  ;;  %v859_v34 = vpop.f32.mrb[5].mxu0 }
 0x59e   :  { %v2871_v35 = vpack.c.bf16 %v2746_v33, %v859_v34  ;;  %v3448_v36 = vpack.i.bf16 %v2746_v33, %v859_v34 }
 0x5a0   :  { %2872 = vmatprep.subr.bf16.mxu1 %v2871_v35 }
 0x5a1   :  { %913 = vperm.xlu0 %2971, %v2746_v33   ;;  %870 = vrot.lane.b32.xlu1 %v859_v34, %s3226_s1 }
 0x5a2   :  { %2874 = vmatpush3.bf16.msra.mxu1 %v2871_v35  ;;  %2973 = vset.pattern.permute.xlu1 %v3225_v9 }
 0x5a5   :  { %2976 = vset.pattern.permute.xlu0 %v3225_v9  ;;  %1169 = vperm.xlu1 %2973, %v2746_v33  }
 0x5a6   :  { %1165 = vperm.xlu0 %2976, %v859_v34  }
 0x5a9   :  { %2974 = vset.pattern.permute.xlu1 %v3224_v0 }
 0x5aa   :  { %2977 = vset.pattern.permute.xlu0 %v3228_v15  ;;  %909 = vperm.xlu1 %2974, %v859_v34  }
 0x5ab   :  { %1300 = vperm.xlu0 %2977, %v2746_v33  }
 0x5ae   :  { %2975 = vset.pattern.permute.xlu1 %v3227_v14 }
 0x5af   :  { %1034 = vperm.xlu1 %2975, %v859_v34   ;;  %2994 = vset.pattern.permute.xlu0 %v3224_v0 }
 0x5b3   :  { %2978 = vset.pattern.permute.xlu1 %v3228_v15 }
 0x5b4   :  { %1296 = vperm.xlu1 %2978, %v859_v34  }
 0x60f   :  { %v873_v41 = vpop.permute.xlu0 %872 }
 0x61c   :  { %v1039_v37 = vpop.permute.xlu1 %1038 }
 0x620   :  { %v871_v38 = vpop.permute.xlu1 %870  ;;  %v914_v47 = vpop.permute.xlu0 %913 }
 0x621   :  { %876 = vxpose.xlu1.b32.start [1/2] (short) (narrow) %v871_v38, 8 }
 0x624   :  { %v1170_v42 = vpop.permute.xlu1 %1169 }
 0x625   :  { %877 = vxpose.xlu1.b32.end [2/2] (short) (narrow) %v873_v41, 8  ;;  %v1166_v58 = vpop.permute.xlu0 %1165 }
 0x629   :  { %v910_v43 = vpop.permute.xlu1 %909 }
 0x62a   :  { %v1301_v20 = vpop.permute.xlu0 %1300 }
 0x62e   :  { %v1035_v45 = vpop.permute.xlu1 %1034 }
 0x633   :  { %v1297_v46 = vpop.permute.xlu1 %1296 }
 0x643   :  { %2995 = vset.pattern.permute.xlu1 %v3227_v14 }
 0x6a1   :  { %v892_v48 = vpop.trf.xlu1 }
 0x6a2   :  { %v919_v49 = vrot.slane %v892_v48, %v3372_v24  ;;  %v1044_v50 = vrot.slane %v892_v48, %v3374_v25  ;;  %v1175_v51 = vrot.slane %v892_v48, %v3376_v26  ;;  %v1306_v8 = vrot.slane %v892_v48, %v3385_v44 }
 0x6a4   :  { %v920_v52 = vadd.f32 %v919_v49, %v910_v43  ;;  %v921_v53 = vadd.f32 %v919_v49, %v914_v47  ;;  %v1045_v54 = vadd.f32 %v1044_v50, %v1035_v45  ;;  %v1046_v55 = vadd.f32 %v1044_v50, %v1039_v37 }
 0x6a5   :  { %v1176_v60 = vadd.f32 %v1175_v51, %v1166_v58  ;;  %v1177_v7 = vadd.f32 %v1175_v51, %v1170_v42  ;;  %v1307_v17 = vadd.f32 %v1306_v8, %v1297_v46  ;;  %v1308_v23 = vadd.f32 %v1306_v8, %v1301_v20 }
 0x6a6   :  { %vm1048_vm1 = vcmp.gt.f32.partialorder %v1046_v55, 0.0  ;;  %v1050_v56 = vmul.f32 0.2, %v1046_v55  ;;  %vm922_vm2 = vcmp.gt.f32.partialorder %v920_v52, 0.0  ;;  %v924_v57 = vmul.f32 0.2, %v920_v52 }
 0x6a7   :  { %vm923_vm3 = vcmp.gt.f32.partialorder %v921_v53, 0.0  ;;  %v925_v59 = vmul.f32 0.2, %v921_v53  ;;  %v1049_v63 = vmul.f32 0.2, %v1045_v54  ;;  %vm1047_vm4 = vcmp.gt.f32.partialorder %v1045_v54, 0.0 }
 0x6a8   :  { %v1052_v61 = vsel %vm1048_vm1, %v1046_v55, %v1050_v56  ;;  %v926_v62 = vsel %vm922_vm2, %v920_v52, %v924_v57  ;;  %v1180_v11 = vmul.f32 0.2, %v1176_v60  ;;  %vm1178_vm6 = vcmp.gt.f32.partialorder %v1176_v60, 0.0 }
 0x6a9   :  { %v3463_v1 = vadd.f32 %v1052_v61, %v3381_v39  ;;  %v928_v2 = vadd.f32 %v926_v62, %v3383_v40  ;;  %v927_v3 = vsel %vm923_vm3, %v921_v53, %v925_v59  ;;  %v1051_v10 = vsel %vm1047_vm4, %v1045_v54, %v1049_v63 }
 0x6aa   :  { %v929_v6 = vadd.f32 %v927_v3, %v3381_v39  ;;  %v1053_v16 = vadd.f32 %v1051_v10, %v3383_v40  ;;  %v1182_v18 = vsel %vm1178_vm6, %v1176_v60, %v1180_v11  ;;  %v1181_v19 = vmul.f32 0.2, %v1177_v7 }
 0x6ab   :  { %v1058_v4 = vsel %vm233_vm5, %v3463_v1, -inf  ;;  %v930_v5 = vsel %vm233_vm5, %v928_v2, -inf  ;;  %vm1179_vm7 = vcmp.gt.f32.partialorder %v1177_v7, 0.0  ;;  %v1184_v22 = vadd.f32 %v1182_v18, %v3383_v40 }
 0x6ac   :  { %1059 = vmax.xlane.f32.xlu1 %v1058_v4  ;;  %931 = vmax.xlane.f32.xlu0 %v930_v5  ;;  %v933_v12 = vsel %vm233_vm5, %v929_v6, -inf  ;;  %v1055_v21 = vsel %vm233_vm5, %v1053_v16, -inf  ;;  %v1183_v13 = vsel %vm1179_vm7, %v1177_v7, %v1181_v19  ;;  %v1311_v27 = vmul.f32 0.2, %v1307_v17 }
 0x6ad   :  { %vm1309_vm8 = vcmp.gt.f32.partialorder %v1307_v17, 0.0  ;;  %v1186_v28 = vsel %vm233_vm5, %v1184_v22, -inf  ;;  %v1185_v29 = vadd.f32 %v1183_v13, %v3381_v39  ;;  %v1312_v31 = vmul.f32 0.2, %v1308_v23 }
 0x6ae   :  { %v1313_v30 = vsel %vm1309_vm8, %v1307_v17, %v1311_v27  ;;  %vm1310_vm9 = vcmp.gt.f32.partialorder %v1308_v23, 0.0 }
 0x6af   :  { %v1189_v32 = vsel %vm233_vm5, %v1185_v29, -inf  ;;  %v1315_v33 = vadd.f32 %v1313_v30, %v3383_v40  ;;  %v1314_v34 = vsel %vm1310_vm9, %v1308_v23, %v1312_v31 }
 0x6b0   :  { %934 = vmax.xlane.f32.xlu0 %v933_v12  ;;  %v1316_v37 = vadd.f32 %v1314_v34, %v3381_v39 }
 0x6b1   :  { %v1317_v35 = vsel %vm233_vm5, %v1315_v33, -inf }
 0x6b2   :  { %v1320_v38 = vsel %vm233_vm5, %v1316_v37, -inf }
 0x6b4   :  { %1056 = vmax.xlane.f32.xlu0 %v1055_v21 }
 0x6b8   :  { %1187 = vmax.xlane.f32.xlu0 %v1186_v28 }
 0x6bc   :  { %1190 = vmax.xlane.f32.xlu0 %v1189_v32 }
 0x6bd   :  { %2980 = vrot.lane.b32.xlu1 %v3448_v36, %s3230_s2 }
 0x6c0   :  { %1318 = vmax.xlane.f32.xlu0 %v1317_v35 }
 0x6c4   :  { %1321 = vmax.xlane.f32.xlu0 %v1320_v38 }
 0x739   :  { %v1060_v41 = vpop.xlane.xlu1 %1059  ;;  %v932_v42 = vpop.xlane.xlu0 %931 }
 0x73a   :  { %v936_v43 = vsub.f32 %v928_v2, %v932_v42  ;;  %v1062_v53 = vsub.f32 %v3463_v1, %v1060_v41 }
 0x73c   :  { %v938_v45 = vmul.f32 1.442695, %v936_v43  ;;  %v1065_v57 = vmul.f32 1.442695, %v1062_v53 }
 0x73d   :  { %v2981_v46 = vpop.permute.xlu1 %2980  ;;  %v935_v47 = vpop.xlane.xlu0 %934 }
 0x73e   :  { %v2983_v48 = vunpack.i.h.bf16 %v2981_v46  ;;  %v2982_v49 = vunpack.i.l.bf16 %v2981_v46  ;;  %v937_v50 = vsub.f32 %v929_v6, %v935_v47  ;;  %3061 = vpow2.f32 %v938_v45 }
 0x740   :  { %v3484_v51 = vpack.c.bf16 %v2983_v48, %v2982_v49  ;;  %v940_v52 = vmul.f32 1.442695, %v937_v50 }
 0x741   :  { %v1057_v54 = vpop.xlane.xlu0 %1056 }
 0x742   :  { %3063 = vpow2.f32 %v940_v52  ;;  %v1061_v55 = vsub.f32 %v1053_v16, %v1057_v54  ;;  %2876 = vmatprep.subr.bf16.mxu1 %v3484_v51 }
 0x744   :  { %v1063_v56 = vmul.f32 1.442695, %v1061_v55 }
 0x745   :  { %v1188_v58 = vpop.xlane.xlu0 %1187 }
 0x746   :  { %3065 = vpow2.f32 %v1063_v56  ;;  %v1192_v59 = vsub.f32 %v1184_v22, %v1188_v58 }
 0x747   :  { %3067 = vpow2.f32 %v1065_v57 }
 0x748   :  { %v3062_v60 = vpop.eup %3061  ;;  %v1194_v61 = vmul.f32 1.442695, %v1192_v59 }
 0x749   :  { %v1191_v62 = vpop.xlane.xlu0 %1190  ;;  %v942_v2 = vsel %vm233_vm5, %v3062_v60, 0.0 }
 0x74a   :  { %v1193_v63 = vsub.f32 %v1185_v29, %v1191_v62  ;;  %943 = vadd.xlane.f32.xlu0 %v942_v2  ;;  %3069 = vpow2.f32 %v1194_v61 }
 0x74c   :  { %v3064_v3 = vpop.eup %3063  ;;  %v1196_v1 = vmul.f32 1.442695, %v1193_v63 }
 0x74d   :  { %v1319_v4 = vpop.xlane.xlu0 %1318  ;;  %v945_v5 = vsel %vm233_vm5, %v3064_v3, 0.0 }
 0x74e   :  { %v1323_v6 = vsub.f32 %v1315_v33, %v1319_v4  ;;  %946 = vadd.xlane.f32.xlu0 %v945_v5  ;;  %3071 = vpow2.f32 %v1196_v1 }
 0x750   :  { %v3066_v7 = vpop.eup %3065  ;;  %v1325_v8 = vmul.f32 1.442695, %v1323_v6 }
 0x751   :  { %v1322_v10 = vpop.xlane.xlu0 %1321  ;;  %v1067_v11 = vsel %vm233_vm5, %v3066_v7, 0.0  ;;  %v3068_v16 = vpop.eup %3067 }
 0x752   :  { %3073 = vpow2.f32 %v1325_v8  ;;  %v1324_v12 = vsub.f32 %v1316_v37, %v1322_v10  ;;  %1068 = vadd.xlane.f32.xlu0 %v1067_v11  ;;  %v1070_v18 = vsel %vm233_vm5, %v3068_v16, 0.0  ;;  %v1476_v10 = vld [vmem:[%s3683_s6] sm:$0xff]  ;;  %v1477_v11 = vld [vmem:[%s3683_s6 + $0x8] sm:$0xff] }
 0x754   :  { %v1327_v17 = vmul.f32 1.442695, %v1324_v12  ;;  %v3070_v19 = vpop.eup %3069  ;;  %v1478_v12 = vld [vmem:[%s3683_s6 + $0x10] sm:$0xff] }
 0x755   :  { %v1198_v20 = vsel %vm233_vm5, %v3070_v19, 0.0 }
 0x756   :  { %3075 = vpow2.f32 %v1327_v17  ;;  %1071 = vadd.xlane.f32.xlu0 %v1070_v18  ;;  %v1479_v17 = vld [vmem:[%s3683_s6 + $0x18] sm:$0xff] }
 0x757   :  { %v2891_v18 = vpack.c.bf16 %v1479_v17, %v1478_v12 }
 0x758   :  { %v3072_v21 = vpop.eup %3071 }
 0x759   :  { %v1201_v13 = vsel %vm233_vm5, %v3072_v21, 0.0 }
 0x75a   :  { %1199 = vadd.xlane.f32.xlu0 %v1198_v20 }
 0x75c   :  { %v3074_v22 = vpop.eup %3073 }
 0x75d   :  { %v1329_v23 = vsel %vm233_vm5, %v3074_v22, 0.0 }
 0x75e   :  { %1330 = vadd.xlane.f32.xlu1 %v1329_v23  ;;  %1202 = vadd.xlane.f32.xlu0 %v1201_v13 }
 0x760   :  { %v3076_v27 = vpop.eup %3075 }
 0x761   :  { %v1332_v28 = vsel %vm233_vm5, %v3076_v27, 0.0 }
 0x762   :  { %1333 = vadd.xlane.f32.xlu0 %v1332_v28 }
 0x76f   :  { %2990 = vrot.lane.b32.xlu1 %v3448_v36, %s3231_s14 }
 0x778   :  { %2985 = vrot.lane.b32.xlu0 %v3448_v36, %s3232_s19 }
 0x7d7   :  { %v944_v29 = vpop.xlane.xlu0 %943 }
 0x7d8   :  { %3077 = vrcp.f32 %v944_v29 }
 0x7db   :  { %v947_v30 = vpop.xlane.xlu0 %946 }
 0x7dc   :  { %3079 = vrcp.f32 %v947_v30 }
 0x7df   :  { %v1069_v31 = vpop.xlane.xlu0 %1068 }
 0x7e0   :  { %3081 = vrcp.f32 %v1069_v31 }
 0x7e2   :  { %v3078_v32 = vpop.eup %3077 }
 0x7e3   :  { %v1072_v33 = vpop.xlane.xlu0 %1071  ;;  %v950_v34 = vmul.f32 %v3078_v32, %v3062_v60 }
 0x7e4   :  { %3083 = vrcp.f32 %v1072_v33 }
 0x7e5   :  { %2751 = vmatprep.mubr.msk.f32.mxu1 %vm233_vm5, %v950_v34 }
 0x7e6   :  { %v3080_v35 = vpop.eup %3079 }
 0x7e7   :  { %v951_v37 = vmul.f32 %v3080_v35, %v3064_v3  ;;  %v1200_v38 = vpop.xlane.xlu0 %1199 }
 0x7e8   :  { %3085 = vrcp.f32 %v1200_v38 }
 0x7e9   :  { %2752 = vmatmul.mubr.msk.f32.vlgmr.msra.gmra.mrb[6].mxu1 %vm233_vm5, %v951_v37 }
 0x7ea   :  { %v3082_v41 = vpop.eup %3081  ;;  %2878 = vmatpush3.bf16.msra.mxu1 %v3484_v51 }
 0x7eb   :  { %v1331_v36 = vpop.xlane.xlu1 %1330  ;;  %v1203_v42 = vpop.xlane.xlu0 %1202  ;;  %v1075_v43 = vmul.f32 %v3082_v41, %v3066_v7 }
 0x7ec   :  { %3087 = vrcp.f32 %v1331_v36 }
 0x7ed   :  { %3089 = vrcp.f32 %v1203_v42  ;;  %2758 = vmatprep.mubr.msk.f32.mxu1 %vm233_vm5, %v1075_v43 }
 0x7ee   :  { %v3084_v45 = vpop.eup %3083 }
 0x7ef   :  { %v2991_v46 = vpop.permute.xlu1 %2990  ;;  %v1076_v47 = vmul.f32 %v3084_v45, %v3068_v16  ;;  %v1334_v50 = vpop.xlane.xlu0 %1333  ;;  %v2887_v16 = vpack.c.bf16 %v1477_v11, %v1476_v10 }
 0x7f0   :  { %v2993_v48 = vunpack.i.h.bf16 %v2991_v46  ;;  %v2992_v49 = vunpack.i.l.bf16 %v2991_v46  ;;  %3091 = vrcp.f32 %v1334_v50 }
 0x7f1   :  { %2759 = vmatmul.mubr.msk.f32.vlgmr.msra.gmra.mrb[8].mxu1 %vm233_vm5, %v1076_v47 }
 0x7f2   :  { %v2883_v52 = vpack.c.bf16 %v2993_v48, %v2992_v49  ;;  %v3086_v53 = vpop.eup %3085 }
 0x7f3   :  { %v2986_v54 = vpop.permute.xlu0 %2985  ;;  %v1206_v51 = vmul.f32 %v3086_v53, %v3070_v19 }
 0x7f4   :  { %2884 = vmatprep.subr.bf16.mxu1 %v2883_v52  ;;  %v2988_v55 = vunpack.i.h.bf16 %v2986_v54  ;;  %v2987_v56 = vunpack.i.l.bf16 %v2986_v54 }
 0x7f5   :  { %2886 = vmatpush3.bf16.msra.mxu1 %v2883_v52  ;;  %2765 = vmatprep.mubr.msk.f32.mxu0 %vm233_vm5, %v1206_v51 }
 0x7f6   :  { %v3088_v57 = vpop.eup %3087  ;;  %v2879_v58 = vpack.c.bf16 %v2988_v55, %v2987_v56 }
 0x7f7   :  { %v1337_v59 = vmul.f32 %v3088_v57, %v3074_v22  ;;  %v3090_v60 = vpop.eup %3089 }
 0x7f8   :  { %2880 = vmatprep.subr.bf16.mxu0 %v2879_v58  ;;  %v1207_v62 = vmul.f32 %v3090_v60, %v3072_v21 }
 0x7f9   :  { %2772 = vmatprep.mubr.msk.f32.mxu1 %vm233_vm5, %v1337_v59  ;;  %2882 = vmatpush3.bf16.msra.mxu0 %v2879_v58 }
 0x7fa   :  { %v3092_v61 = vpop.eup %3091  ;;  %2888 = vmatprep.subr.bf16.mxu0 %v2887_v16 }
 0x7fb   :  { %v1338_v63 = vmul.f32 %v3092_v61, %v3076_v27  ;;  %v2594_v27 = vld [vmem:[%s3682_s5] ss:$0 sm:$0xff] }
 0x7fc   :  { %2766 = vmatmul.mubr.msk.f32.vlgmr.msra.gmra.mrb[6].mxu0 %vm233_vm5, %v1207_v62 }
 0x7fd   :  { %2773 = vmatmul.mubr.msk.f32.vlgmr.msra.gmra.mrb[10].mxu1 %vm233_vm5, %v1338_v63  ;;  %2890 = vmatpush3.bf16.msra.mxu0 %v2887_v16 }
 0x7fe   :  { %2892 = vmatprep.subr.bf16.mxu0 %v2891_v18 }
 0x801   :  { %2894 = vmatpush3.bf16.msra.mxu0 %v2891_v18 }
 0x8bc   :  { %v2753_v2 = vpop.f32.mrb[6].mxu1 }
 0x8bd   :  { %v1024_v3 = vpop.f32.mrb[7].mxu1 }
 0x8c4   :  { %v2760_v1 = vpop.f32.mrb[8].mxu1 }
 0x8c5   :  { %v1155_v4 = vpop.f32.mrb[9].mxu1 }
 0x8cf   :  { %v2767_v5 = vpop.f32.mrb[6].mxu0 }
 0x8d0   :  { %1438 = vrot.lane.b32.xlu0 %v2767_v5, %s3233_s20  ;;  %v1286_v6 = vpop.f32.mrb[7].mxu0  ;;  %v2774_v7 = vpop.f32.mrb[10].mxu1 }
 0x8d1   :  { %1436 = vrot.lane.b32.xlu1 %v1286_v6, %s3233_s20  ;;  %v1417_v8 = vpop.f32.mrb[11].mxu1 }
 0x8d4   :  { %1430 = vrot.lane.b32.xlu0 %v2760_v1, %s3222_s26 }
 0x8d5   :  { %1428 = vrot.lane.b32.xlu1 %v1155_v4, %s3222_s26 }
 0x8d8   :  { %1446 = vrot.lane.b32.xlu0 %v2774_v7, %s3234_s21 }
 0x8d9   :  { %1444 = vrot.lane.b32.xlu1 %v1417_v8, %s3234_s21 }
 0x942   :  { %v1439_v19 = vpop.permute.xlu0 %1438 }
 0x943   :  { %v1437_v20 = vpop.permute.xlu1 %1436 }
 0x946   :  { %v1431_v21 = vpop.permute.xlu0 %1430 }
 0x947   :  { %v1451_v22 = vsel %vm754_vm12, %v2753_v2, %v1431_v21  ;;  %v1429_v23 = vpop.permute.xlu1 %1428 }
 0x948   :  { %v1450_v13 = vsel %vm754_vm12, %v1024_v3, %v1429_v23  ;;  %v1453_v28 = vsel %vm233_vm5, %v1451_v22, %v1439_v19 }
 0x949   :  { %v1452_v31 = vsel %vm233_vm5, %v1450_v13, %v1437_v20 }
 0x94a   :  { %v1447_v29 = vpop.permute.xlu0 %1446 }
 0x94b   :  { %v1455_v30 = vsel %vm759_vm13, %v1453_v28, %v1447_v29  ;;  %v1445_v32 = vpop.permute.xlu1 %1444 }
 0x94c   :  { %v1463_v33 = vadd.f32 %v2594_v27, %v1455_v30  ;;  %v1454_v34 = vsel %vm759_vm13, %v1452_v31, %v1445_v32 }
 0x94d   :  { %v1462_v35 = vadd.f32 %v2594_v27, %v1454_v34 }
 0x94e   :  { %v1467_v37 = vmin.f32 %v1463_v33, 0.0  ;;  %vm1465_vm11 = vcmp.gt.f32.partialorder %v1463_v33, 0.0 }
 0x94f   :  { %v1466_v38 = vmin.f32 %v1462_v35, 0.0  ;;  %vm1464_vm10 = vcmp.gt.f32.partialorder %v1462_v35, 0.0 }
 0x950   :  { %v1470_v41 = vmul.f32 1.442695, %v1467_v37 }
 0x951   :  { %v1468_v36 = vmul.f32 1.442695, %v1466_v38 }
 0x952   :  { %3093 = vpow2.f32 %v1470_v41 }
 0x953   :  { %3095 = vpow2.f32 %v1468_v36 }
 0x95c   :  { %v3094_v42 = vpop.eup %3093 }
 0x95d   :  { %v3096_v43 = vpop.eup %3095  ;;  %v2596_v45 = vadd.f32 -1.0, %v3094_v42 }
 0x95e   :  { %v2595_v46 = vadd.f32 -1.0, %v3096_v43 }
 0x95f   :  { %v1475_v48 = vsel %vm1465_vm11, %v1463_v33, %v2596_v45  ;;  %vm2562_vm11 = vcmask 31744  }
 0x960   :  { %v1474_v47 = vsel %vm1464_vm10, %v1462_v35, %v2595_v46 }
 0x961   :  { %2783 = vmatprep.mubr.msk.f32.mxu0 %vm89_vm0, %v1474_v47 }
 0x962   :  { %2784 = vmatmul.mubr.msk.f32.vlgmr.msra.gmra.mrb[8].mxu0 %vm89_vm0, %v1475_v48 }
 0xa35   :  { %v2785_v49 = vpop.f32.mrb[8].mxu0 }
 0xa36   :  { %1732 = vperm.xlu1 %2995, %v2785_v49   ;;  %1566 = vrot.lane.b32.xlu0 %v2785_v49, %s3226_s1  ;;  %v1553_v50 = vpop.f32.mrb[9].mxu0 }
 0xa37   :  { %v2895_v52 = vpack.c.bf16 %v2785_v49, %v1553_v50  ;;  %v3539_v53 = vpack.i.bf16 %v2785_v49, %v1553_v50 }
 0xa39   :  { %2896 = vmatprep.subr.bf16.mxu1 %v2895_v52 }
 0xa3a   :  { %1607 = vperm.xlu0 %2994, %v2785_v49   ;;  %1564 = vrot.lane.b32.xlu1 %v1553_v50, %s3226_s1 }
 0xa3b   :  { %2898 = vmatpush3.bf16.msra.mxu1 %v2895_v52  ;;  %2996 = vset.pattern.permute.xlu1 %v3225_v9 }
 0xa3e   :  { %2999 = vset.pattern.permute.xlu0 %v3225_v9  ;;  %1863 = vperm.xlu1 %2996, %v2785_v49  }
 0xa3f   :  { %1859 = vperm.xlu0 %2999, %v1553_v50  }
 0xa42   :  { %2997 = vset.pattern.permute.xlu1 %v3224_v0 }
 0xa43   :  { %3000 = vset.pattern.permute.xlu0 %v3228_v15  ;;  %1603 = vperm.xlu1 %2997, %v1553_v50  }
 0xa44   :  { %1994 = vperm.xlu0 %3000, %v2785_v49  }
 0xa47   :  { %2998 = vset.pattern.permute.xlu1 %v3227_v14 }
 0xa48   :  { %1728 = vperm.xlu1 %2998, %v1553_v50  }
 0xa4c   :  { %3001 = vset.pattern.permute.xlu1 %v3228_v15 }
 0xa4d   :  { %1990 = vperm.xlu1 %3001, %v1553_v50  }
 0xaa8   :  { %v1567_v55 = vpop.permute.xlu0 %1566 }
 0xab5   :  { %v1733_v54 = vpop.permute.xlu1 %1732 }
 0xab9   :  { %v1565_v51 = vpop.permute.xlu1 %1564  ;;  %v1608_v0 = vpop.permute.xlu0 %1607 }
 0xaba   :  { %1570 = vxpose.xlu1.b32.start [1/2] (short) (narrow) %v1565_v51, 8 }
 0xabd   :  { %v1864_v9 = vpop.permute.xlu1 %1863 }
 0xabe   :  { %1571 = vxpose.xlu1.b32.end [2/2] (short) (narrow) %v1567_v55, 8  ;;  %v1860_v4 = vpop.permute.xlu0 %1859 }
 0xac2   :  { %v1604_v56 = vpop.permute.xlu1 %1603 }
 0xac3   :  { %v1995_v30 = vpop.permute.xlu0 %1994 }
 0xac7   :  { %v1729_v57 = vpop.permute.xlu1 %1728 }
 0xacc   :  { %v1991_v58 = vpop.permute.xlu1 %1990 }
 0xb3a   :  { %v1586_v59 = vpop.trf.xlu1 }
 0xb3b   :  { %v1613_v60 = vrot.slane %v1586_v59, %v3372_v24  ;;  %v1738_v61 = vrot.slane %v1586_v59, %v3374_v25  ;;  %v1869_v14 = vrot.slane %v1586_v59, %v3376_v26  ;;  %v2000_v20 = vrot.slane %v1586_v59, %v3385_v44 }
 0xb3d   :  { %v1614_v62 = vadd.f32 %v1613_v60, %v1604_v56  ;;  %v1615_v15 = vadd.f32 %v1613_v60, %v1608_v0  ;;  %v1739_v63 = vadd.f32 %v1738_v61, %v1729_v57  ;;  %v1740_v2 = vadd.f32 %v1738_v61, %v1733_v54 }
 0xb3e   :  { %v1870_v6 = vadd.f32 %v1869_v14, %v1860_v4  ;;  %v1871_v19 = vadd.f32 %v1869_v14, %v1864_v9  ;;  %v2001_v27 = vadd.f32 %v2000_v20, %v1991_v58  ;;  %v2002_v44 = vadd.f32 %v2000_v20, %v1995_v30 }
 0xb3f   :  { %vm1742_vm14 = vcmp.gt.f32.partialorder %v1740_v2, 0.0  ;;  %v1744_v3 = vmul.f32 0.2, %v1740_v2  ;;  %vm1616_vm15 = vcmp.gt.f32.partialorder %v1614_v62, 0.0  ;;  %v1618_v1 = vmul.f32 0.2, %v1614_v62 }
 0xb40   :  { %vm1617_vm1 = vcmp.gt.f32.partialorder %v1615_v15, 0.0  ;;  %v1619_v5 = vmul.f32 0.2, %v1615_v15  ;;  %v1743_v10 = vmul.f32 0.2, %v1739_v63  ;;  %vm1741_vm2 = vcmp.gt.f32.partialorder %v1739_v63, 0.0 }
 0xb41   :  { %v1746_v7 = vsel %vm1742_vm14, %v1740_v2, %v1744_v3  ;;  %v1620_v8 = vsel %vm1616_vm15, %v1614_v62, %v1618_v1  ;;  %v1874_v22 = vmul.f32 0.2, %v1870_v6  ;;  %vm1872_vm3 = vcmp.gt.f32.partialorder %v1870_v6, 0.0 }
 0xb42   :  { %v3552_v11 = vadd.f32 %v1746_v7, %v3381_v39  ;;  %v1622_v26 = vadd.f32 %v1620_v8, %v3383_v40  ;;  %v1621_v12 = vsel %vm1617_vm1, %v1615_v15, %v1619_v5  ;;  %v1745_v21 = vsel %vm1741_vm2, %v1739_v63, %v1743_v10 }
 0xb43   :  { %v1623_v18 = vadd.f32 %v1621_v12, %v3381_v39  ;;  %v1747_v13 = vadd.f32 %v1745_v21, %v3383_v40  ;;  %v1876_v28 = vsel %vm1872_vm3, %v1870_v6, %v1874_v22  ;;  %v1875_v29 = vmul.f32 0.2, %v1871_v19 }
 0xb44   :  { %v1752_v16 = vsel %vm233_vm5, %v3552_v11, -inf  ;;  %v1624_v17 = vsel %vm233_vm5, %v1622_v26, -inf  ;;  %vm1873_vm4 = vcmp.gt.f32.partialorder %v1871_v19, 0.0  ;;  %v1878_v32 = vadd.f32 %v1876_v28, %v3383_v40 }
 0xb45   :  { %1753 = vmax.xlane.f32.xlu1 %v1752_v16  ;;  %1625 = vmax.xlane.f32.xlu0 %v1624_v17  ;;  %v1627_v23 = vsel %vm233_vm5, %v1623_v18, -inf  ;;  %v1749_v31 = vsel %vm233_vm5, %v1747_v13, -inf  ;;  %v1877_v33 = vsel %vm1873_vm4, %v1871_v19, %v1875_v29  ;;  %v2005_v34 = vmul.f32 0.2, %v2001_v27 }
 0xb46   :  { %vm2003_vm6 = vcmp.gt.f32.partialorder %v2001_v27, 0.0  ;;  %v1880_v35 = vsel %vm233_vm5, %v1878_v32, -inf  ;;  %v1879_v37 = vadd.f32 %v1877_v33, %v3381_v39  ;;  %v2006_v41 = vmul.f32 0.2, %v2002_v44 }
 0xb47   :  { %v2007_v38 = vsel %vm2003_vm6, %v2001_v27, %v2005_v34  ;;  %vm2004_vm7 = vcmp.gt.f32.partialorder %v2002_v44, 0.0 }
 0xb48   :  { %v1883_v36 = vsel %vm233_vm5, %v1879_v37, -inf  ;;  %v2009_v42 = vadd.f32 %v2007_v38, %v3383_v40  ;;  %v2008_v43 = vsel %vm2004_vm7, %v2002_v44, %v2006_v41 }
 0xb49   :  { %1628 = vmax.xlane.f32.xlu0 %v1627_v23  ;;  %v2010_v46 = vadd.f32 %v2008_v43, %v3381_v39 }
 0xb4a   :  { %v2011_v45 = vsel %vm233_vm5, %v2009_v42, -inf }
 0xb4b   :  { %v2014_v47 = vsel %vm233_vm5, %v2010_v46, -inf }
 0xb4d   :  { %1750 = vmax.xlane.f32.xlu0 %v1749_v31 }
 0xb51   :  { %1881 = vmax.xlane.f32.xlu0 %v1880_v35 }
 0xb55   :  { %1884 = vmax.xlane.f32.xlu0 %v1883_v36 }
 0xb56   :  { %3003 = vrot.lane.b32.xlu1 %v3539_v53, %s3230_s2 }
 0xb59   :  { %2012 = vmax.xlane.f32.xlu0 %v2011_v45 }
 0xb5d   :  { %2015 = vmax.xlane.f32.xlu0 %v2014_v47 }
 0xbd2   :  { %v1754_v48 = vpop.xlane.xlu1 %1753  ;;  %v1626_v49 = vpop.xlane.xlu0 %1625 }
 0xbd3   :  { %v1630_v50 = vsub.f32 %v1622_v26, %v1626_v49  ;;  %v1756_v0 = vsub.f32 %v3552_v11, %v1754_v48 }
 0xbd5   :  { %v1632_v52 = vmul.f32 1.442695, %v1630_v50  ;;  %v1759_v14 = vmul.f32 1.442695, %v1756_v0 }
 0xbd6   :  { %v3004_v54 = vpop.permute.xlu1 %3003  ;;  %v1629_v51 = vpop.xlane.xlu0 %1628 }
 0xbd7   :  { %v3006_v55 = vunpack.i.h.bf16 %v3004_v54  ;;  %v3005_v9 = vunpack.i.l.bf16 %v3004_v54  ;;  %v1631_v56 = vsub.f32 %v1623_v18, %v1629_v51  ;;  %3097 = vpow2.f32 %v1632_v52 }
 0xbd9   :  { %v3573_v57 = vpack.c.bf16 %v3006_v55, %v3005_v9  ;;  %v1634_v58 = vmul.f32 1.442695, %v1631_v56 }
 0xbda   :  { %v1751_v59 = vpop.xlane.xlu0 %1750 }
 0xbdb   :  { %3099 = vpow2.f32 %v1634_v58  ;;  %v1755_v60 = vsub.f32 %v1747_v13, %v1751_v59  ;;  %2900 = vmatprep.subr.bf16.mxu1 %v3573_v57 }
 0xbdd   :  { %v1757_v61 = vmul.f32 1.442695, %v1755_v60 }
 0xbde   :  { %v1882_v62 = vpop.xlane.xlu0 %1881 }
 0xbdf   :  { %3101 = vpow2.f32 %v1757_v61  ;;  %v1886_v15 = vsub.f32 %v1878_v32, %v1882_v62 }
 0xbe0   :  { %3103 = vpow2.f32 %v1759_v14 }
 0xbe1   :  { %v3098_v63 = vpop.eup %3097  ;;  %v1888_v2 = vmul.f32 1.442695, %v1886_v15 }
 0xbe2   :  { %v1885_v3 = vpop.xlane.xlu0 %1884  ;;  %v1636_v4 = vsel %vm233_vm5, %v3098_v63, 0.0 }
 0xbe3   :  { %v1887_v1 = vsub.f32 %v1879_v37, %v1885_v3  ;;  %1637 = vadd.xlane.f32.xlu0 %v1636_v4  ;;  %3105 = vpow2.f32 %v1888_v2 }
 0xbe5   :  { %v3100_v5 = vpop.eup %3099  ;;  %v1890_v6 = vmul.f32 1.442695, %v1887_v1 }
 0xbe6   :  { %v2013_v7 = vpop.xlane.xlu0 %2012  ;;  %v1639_v8 = vsel %vm233_vm5, %v3100_v5, 0.0 }
 0xbe7   :  { %v2017_v10 = vsub.f32 %v2009_v42, %v2013_v7  ;;  %1640 = vadd.xlane.f32.xlu0 %v1639_v8  ;;  %3107 = vpow2.f32 %v1890_v6  ;;  %v2170_v6 = vld [vmem:[%s3685_s8] sm:$0xff]  ;;  %v2171_v7 = vld [vmem:[%s3685_s8 + $0x8] sm:$0xff]  ;;  %v2172_v8 = vld [vmem:[%s3685_s8 + $0x10] sm:$0xff] }
 0xbe9   :  { %v3102_v11 = vpop.eup %3101  ;;  %v2019_v26 = vmul.f32 1.442695, %v2017_v10  ;;  %v2911_v10 = vpack.c.bf16 %v2171_v7, %v2170_v6 }
 0xbea   :  { %v2016_v12 = vpop.xlane.xlu0 %2015  ;;  %v1761_v16 = vsel %vm233_vm5, %v3102_v11, 0.0  ;;  %v3104_v18 = vpop.eup %3103 }
 0xbeb   :  { %3109 = vpow2.f32 %v2019_v26  ;;  %v2018_v17 = vsub.f32 %v2010_v46, %v2016_v12  ;;  %1762 = vadd.xlane.f32.xlu0 %v1761_v16  ;;  %v1764_v20 = vsel %vm233_vm5, %v3104_v18, 0.0 }
 0xbed   :  { %v2021_v19 = vmul.f32 1.442695, %v2018_v17  ;;  %v3106_v21 = vpop.eup %3105 }
 0xbee   :  { %v1892_v22 = vsel %vm233_vm5, %v3106_v21, 0.0 }
 0xbef   :  { %3111 = vpow2.f32 %v2021_v19  ;;  %1765 = vadd.xlane.f32.xlu0 %v1764_v20 }
 0xbf1   :  { %v3108_v23 = vpop.eup %3107 }
 0xbf2   :  { %v1895_v28 = vsel %vm233_vm5, %v3108_v23, 0.0 }
 0xbf3   :  { %1893 = vadd.xlane.f32.xlu0 %v1892_v22 }
 0xbf5   :  { %v3110_v13 = vpop.eup %3109 }
 0xbf6   :  { %v2023_v27 = vsel %vm233_vm5, %v3110_v13, 0.0 }
 0xbf7   :  { %2024 = vadd.xlane.f32.xlu1 %v2023_v27  ;;  %1896 = vadd.xlane.f32.xlu0 %v1895_v28 }
 0xbf9   :  { %v3112_v29 = vpop.eup %3111 }
 0xbfa   :  { %v2026_v30 = vsel %vm233_vm5, %v3112_v29, 0.0 }
 0xbfb   :  { %2027 = vadd.xlane.f32.xlu0 %v2026_v30 }
 0xc08   :  { %3013 = vrot.lane.b32.xlu1 %v3539_v53, %s3231_s14 }
 0xc11   :  { %3008 = vrot.lane.b32.xlu0 %v3539_v53, %s3232_s19 }
 0xc70   :  { %v1638_v31 = vpop.xlane.xlu0 %1637 }
 0xc71   :  { %3113 = vrcp.f32 %v1638_v31 }
 0xc74   :  { %v1641_v32 = vpop.xlane.xlu0 %1640 }
 0xc75   :  { %3115 = vrcp.f32 %v1641_v32 }
 0xc78   :  { %v1763_v44 = vpop.xlane.xlu0 %1762 }
 0xc79   :  { %3117 = vrcp.f32 %v1763_v44 }
 0xc7b   :  { %v3114_v33 = vpop.eup %3113 }
 0xc7c   :  { %v1766_v34 = vpop.xlane.xlu0 %1765  ;;  %v1644_v35 = vmul.f32 %v3114_v33, %v3098_v63 }
 0xc7d   :  { %3119 = vrcp.f32 %v1766_v34 }
 0xc7e   :  { %2790 = vmatprep.mubr.msk.f32.mxu1 %vm233_vm5, %v1644_v35 }
 0xc7f   :  { %v3116_v37 = vpop.eup %3115 }
 0xc80   :  { %v1645_v38 = vmul.f32 %v3116_v37, %v3100_v5  ;;  %v1894_v41 = vpop.xlane.xlu0 %1893 }
 0xc81   :  { %3121 = vrcp.f32 %v1894_v41 }
 0xc82   :  { %2791 = vmatmul.mubr.msk.f32.vlgmr.msra.gmra.mrb[12].mxu1 %vm233_vm5, %v1645_v38 }
 0xc83   :  { %v3118_v36 = vpop.eup %3117  ;;  %2902 = vmatpush3.bf16.msra.mxu1 %v3573_v57 }
 0xc84   :  { %v2025_v53 = vpop.xlane.xlu1 %2024  ;;  %v1897_v42 = vpop.xlane.xlu0 %1896  ;;  %v1769_v43 = vmul.f32 %v3118_v36, %v3102_v11  ;;  %v2173_v11 = vld [vmem:[%s3685_s8 + $0x18] sm:$0xff] }
 0xc85   :  { %3123 = vrcp.f32 %v2025_v53  ;;  %v2915_v26 = vpack.c.bf16 %v2173_v11, %v2172_v8 }
 0xc86   :  { %3125 = vrcp.f32 %v1897_v42  ;;  %2797 = vmatprep.mubr.msk.f32.mxu1 %vm233_vm5, %v1769_v43  ;;  %v3235_v42 = vmov 11  }
 0xc87   :  { %v3120_v45 = vpop.eup %3119  ;;  %3018 = vset.pattern.permute.xlu0 %v3235_v42  ;;  %3017 = vset.pattern.permute.xlu1 %v3235_v42 }
 0xc88   :  { %v3014_v46 = vpop.permute.xlu1 %3013  ;;  %v1770_v47 = vmul.f32 %v3120_v45, %v3104_v18  ;;  %v2028_v50 = vpop.xlane.xlu0 %2027 }
 0xc89   :  { %v3016_v48 = vunpack.i.h.bf16 %v3014_v46  ;;  %v3015_v49 = vunpack.i.l.bf16 %v3014_v46  ;;  %3127 = vrcp.f32 %v2028_v50 }
 0xc8a   :  { %2798 = vmatmul.mubr.msk.f32.vlgmr.msra.gmra.mrb[14].mxu1 %vm233_vm5, %v1770_v47 }
 0xc8b   :  { %v2907_v52 = vpack.c.bf16 %v3016_v48, %v3015_v49  ;;  %v3122_v54 = vpop.eup %3121  ;;  %v3236_v48 = vmov 10  }
 0xc8c   :  { %v3009_v51 = vpop.permute.xlu0 %3008  ;;  %v1900_v55 = vmul.f32 %v3122_v54, %v3106_v21  ;;  %v2607_v21 = vld [vmem:[%s3684_s7] ss:$0 sm:$0xff]  ;;  %s3237_s7 = smov 124  }
 0xc8d   :  { %2908 = vmatprep.subr.bf16.mxu1 %v2907_v52  ;;  %v3011_v9 = vunpack.i.h.bf16 %v3009_v51  ;;  %v3010_v56 = vunpack.i.l.bf16 %v3009_v51 }
 0xc8e   :  { %2910 = vmatpush3.bf16.msra.mxu1 %v2907_v52  ;;  %2804 = vmatprep.mubr.msk.f32.mxu0 %vm233_vm5, %v1900_v55 }
 0xc8f   :  { %v3124_v57 = vpop.eup %3123  ;;  %v2903_v58 = vpack.c.bf16 %v3011_v9, %v3010_v56 }
 0xc90   :  { %v2031_v0 = vmul.f32 %v3124_v57, %v3110_v13  ;;  %v3126_v59 = vpop.eup %3125 }
 0xc91   :  { %2904 = vmatprep.subr.bf16.mxu0 %v2903_v58  ;;  %v1901_v61 = vmul.f32 %v3126_v59, %v3108_v23 }
 0xc92   :  { %2811 = vmatprep.mubr.msk.f32.mxu1 %vm233_vm5, %v2031_v0  ;;  %2906 = vmatpush3.bf16.msra.mxu0 %v2903_v58 }
 0xc93   :  { %v3128_v60 = vpop.eup %3127  ;;  %2912 = vmatprep.subr.bf16.mxu0 %v2911_v10 }
 0xc94   :  { %v2032_v14 = vmul.f32 %v3128_v60, %v3112_v29 }
 0xc95   :  { %2805 = vmatmul.mubr.msk.f32.vlgmr.msra.gmra.mrb[10].mxu0 %vm233_vm5, %v1901_v61 }
 0xc96   :  { %2812 = vmatmul.mubr.msk.f32.vlgmr.msra.gmra.mrb[16].mxu1 %vm233_vm5, %v2032_v14  ;;  %2914 = vmatpush3.bf16.msra.mxu0 %v2911_v10 }
 0xc97   :  { %2916 = vmatprep.subr.bf16.mxu0 %v2915_v26 }
 0xc9a   :  { %2918 = vmatpush3.bf16.msra.mxu0 %v2915_v26 }
 0xd55   :  { %v2792_v62 = vpop.f32.mrb[12].mxu1 }
 0xd56   :  { %v1718_v15 = vpop.f32.mrb[13].mxu1 }
 0xd5d   :  { %v2799_v63 = vpop.f32.mrb[14].mxu1 }
 0xd5e   :  { %v1849_v2 = vpop.f32.mrb[15].mxu1 }
 0xd68   :  { %v2806_v3 = vpop.f32.mrb[10].mxu0 }
 0xd69   :  { %2132 = vrot.lane.b32.xlu0 %v2806_v3, %s3233_s20  ;;  %v1980_v1 = vpop.f32.mrb[11].mxu0  ;;  %v2813_v4 = vpop.f32.mrb[16].mxu1 }
 0xd6a   :  { %2130 = vrot.lane.b32.xlu1 %v1980_v1, %s3233_s20  ;;  %v2111_v5 = vpop.f32.mrb[17].mxu1 }
 0xd6d   :  { %2124 = vrot.lane.b32.xlu0 %v2799_v63, %s3222_s26 }
 0xd6e   :  { %2122 = vrot.lane.b32.xlu1 %v1849_v2, %s3222_s26 }
 0xd71   :  { %2140 = vrot.lane.b32.xlu0 %v2813_v4, %s3234_s21 }
 0xd72   :  { %2138 = vrot.lane.b32.xlu1 %v2111_v5, %s3234_s21 }
 0xddb   :  { %v2133_v12 = vpop.permute.xlu0 %2132 }
 0xddc   :  { %v2131_v16 = vpop.permute.xlu1 %2130 }
 0xddf   :  { %v2125_v17 = vpop.permute.xlu0 %2124 }
 0xde0   :  { %v2145_v18 = vsel %vm754_vm12, %v2792_v62, %v2125_v17  ;;  %v2123_v19 = vpop.permute.xlu1 %2122 }
 0xde1   :  { %v2144_v20 = vsel %vm754_vm12, %v1718_v15, %v2123_v19  ;;  %v2147_v22 = vsel %vm233_vm5, %v2145_v18, %v2133_v12 }
 0xde2   :  { %v2146_v27 = vsel %vm233_vm5, %v2144_v20, %v2131_v16 }
 0xde3   :  { %v2141_v23 = vpop.permute.xlu0 %2140 }
 0xde4   :  { %v2149_v13 = vsel %vm759_vm13, %v2147_v22, %v2141_v23  ;;  %v2139_v28 = vpop.permute.xlu1 %2138 }
 0xde5   :  { %v2157_v29 = vadd.f32 %v2607_v21, %v2149_v13  ;;  %v2148_v30 = vsel %vm759_vm13, %v2146_v27, %v2139_v28 }
 0xde6   :  { %v2156_v31 = vadd.f32 %v2607_v21, %v2148_v30 }
 0xde7   :  { %v2161_v32 = vmin.f32 %v2157_v29, 0.0  ;;  %vm2159_vm8 = vcmp.gt.f32.partialorder %v2157_v29, 0.0 }
 0xde8   :  { %v2160_v44 = vmin.f32 %v2156_v31, 0.0  ;;  %vm2158_vm12 = vcmp.gt.f32.partialorder %v2156_v31, 0.0 }
 0xde9   :  { %v2164_v33 = vmul.f32 1.442695, %v2161_v32 }
 0xdea   :  { %v2162_v34 = vmul.f32 1.442695, %v2160_v44 }
 0xdeb   :  { %3129 = vpow2.f32 %v2164_v33 }
 0xdec   :  { %3131 = vpow2.f32 %v2162_v34 }
 0xdf5   :  { %v3130_v35 = vpop.eup %3129 }
 0xdf6   :  { %v3132_v37 = vpop.eup %3131  ;;  %v2609_v38 = vadd.f32 -1.0, %v3130_v35 }
 0xdf7   :  { %v2608_v41 = vadd.f32 -1.0, %v3132_v37 }
 0xdf8   :  { %v2169_v53 = vsel %vm2159_vm8, %v2157_v29, %v2609_v38 }
 0xdf9   :  { %v2168_v36 = vsel %vm2158_vm12, %v2156_v31, %v2608_v41 }
 0xdfa   :  { %2822 = vmatprep.mubr.msk.f32.mxu0 %vm89_vm0, %v2168_v36 }
 0xdfb   :  { %2823 = vmatmul.mubr.msk.f32.vlgmr.msra.gmra.mrb[12].mxu0 %vm89_vm0, %v2169_v53 }
 0xece   :  { %v3627_v43 = vpop.f32.mrb[12].mxu0 }
 0xecf   :  { %2260 = vrot.lane.b32.xlu0 %v3627_v43, %s3230_s2  ;;  %v3631_v45 = vpop.f32.mrb[13].mxu0 }
 0xed0   :  { %v3020_v46 = vpack.i.bf16 %v3627_v43, %v3631_v45  ;;  %2258 = vrot.lane.b32.xlu1 %v3631_v45, %s3230_s2  ;;  %v3639_v47 = vpack.c.bf16 %v3627_v43, %v3631_v45 }
 0xed3   :  { %2345 = vperm.xlu0 %3018, %v3627_v43  }
 0xed4   :  { %2341 = vperm.xlu1 %3017, %v3631_v45  }
 0xed8   :  { %3019 = vset.pattern.permute.xlu1 %v3236_v48 }
 0xed9   :  { %2297 = vperm.xlu1 %3019, %v3631_v45  }
 0xedd   :  { %2301 = vperm.xlu1 %3019, %v3627_v43  }
 0xf41   :  { %v2261_v50 = vpop.permute.xlu0 %2260 }
 0xf42   :  { %v2259_v49 = vpop.permute.xlu1 %2258 }
 0xf43   :  { %2264 = vxpose.xlu0.b32.start [1/2] (short) (narrow) %v2259_v49, 8 }
 0xf47   :  { %2265 = vxpose.xlu0.b32.end [2/2] (short) (narrow) %v2261_v50, 8 }
 0xf52   :  { %v2346_v54 = vpop.permute.xlu0 %2345 }
 0xf53   :  { %v2342_v52 = vpop.permute.xlu1 %2341 }
 0xf58   :  { %v2298_v51 = vpop.permute.xlu1 %2297 }
 0xf5c   :  { %v2302_v57 = vpop.permute.xlu1 %2301 }
 0xfc3   :  { %v2280_v55 = vpop.trf.xlu0 }
 0xfc4   :  { %v2307_v9 = vrot.slane %v2280_v55, %v3372_v24  ;;  %v2351_v56 = vrot.slane %v2280_v55, %v3374_v25 }
 0xfc6   :  { %v2308_v58 = vadd.f32 %v2307_v9, %v2298_v51  ;;  %v2309_v0 = vadd.f32 %v2307_v9, %v2302_v57  ;;  %v2352_v59 = vadd.f32 %v2351_v56, %v2342_v52  ;;  %v2353_v60 = vadd.f32 %v2351_v56, %v2346_v54  ;;  %v2616_v52 = vld [vmem:[%s3686_s9] ss:$0 sm:$0xff] }
 0xfc8   :  { %v2312_v61 = vmul.f32 0.2, %v2308_v58  ;;  %v2356_v14 = vmul.f32 0.2, %v2352_v59  ;;  %v2357_v62 = vmul.f32 0.2, %v2353_v60 }
 0xfc9   :  { %vm2355_vm0 = vcmp.gt.f32.partialorder %v2353_v60, 0.0  ;;  %vm2354_vm13 = vcmp.gt.f32.partialorder %v2352_v59, 0.0  ;;  %vm2310_vm9 = vcmp.gt.f32.partialorder %v2308_v58, 0.0  ;;  %v2313_v15 = vmul.f32 0.2, %v2309_v0 }
 0xfca   :  { %v2358_v63 = vsel %vm2354_vm13, %v2352_v59, %v2356_v14  ;;  %v2314_v2 = vsel %vm2310_vm9, %v2308_v58, %v2312_v61  ;;  %v2359_v3 = vsel %vm2355_vm0, %v2353_v60, %v2357_v62  ;;  %vm2311_vm10 = vcmp.gt.f32.partialorder %v2309_v0, 0.0 }
 0xfcb   :  { %v2360_v1 = vadd.f32 %v2358_v63, %v3383_v40  ;;  %v2361_v24 = vadd.f32 %v2359_v3, %v3381_v39  ;;  %v2316_v4 = vadd.f32 %v2314_v2, %v3383_v40  ;;  %v2315_v6 = vsel %vm2311_vm10, %v2309_v0, %v2313_v15 }
 0xfcc   :  { %v2317_v8 = vadd.f32 %v2315_v6, %v3381_v39 }
 0xfcd   :  { %v2362_v25 = vsel %vm233_vm5, %v2360_v1, -inf  ;;  %v2365_v5 = vsel %vm233_vm5, %v2361_v24, -inf  ;;  %v2318_v7 = vsel %vm233_vm5, %v2316_v4, -inf }
 0xfce   :  { %2363 = vmax.xlane.f32.xlu1 %v2362_v25  ;;  %2366 = vmax.xlane.f32.xlu0 %v2365_v5  ;;  %v2321_v10 = vsel %vm233_vm5, %v2317_v8, -inf }
 0xfd2   :  { %2319 = vmax.xlane.f32.xlu1 %v2318_v7 }
 0xfd6   :  { %2322 = vmax.xlane.f32.xlu1 %v2321_v10 }
0x105b   :  { %v2364_v11 = vpop.xlane.xlu1 %2363  ;;  %v2367_v18 = vpop.xlane.xlu0 %2366 }
0x105c   :  { %v2368_v16 = vsub.f32 %v2360_v1, %v2364_v11  ;;  %v2369_v20 = vsub.f32 %v2361_v24, %v2367_v18 }
0x105e   :  { %v2370_v21 = vmul.f32 1.442695, %v2368_v16  ;;  %v2372_v23 = vmul.f32 1.442695, %v2369_v20 }
0x105f   :  { %v2320_v26 = vpop.xlane.xlu1 %2319 }
0x1060   :  { %v2324_v12 = vsub.f32 %v2316_v4, %v2320_v26 }
0x1062   :  { %v2326_v17 = vmul.f32 1.442695, %v2324_v12 }
0x1063   :  { %v2323_v40 = vpop.xlane.xlu1 %2322 }
0x1064   :  { %3133 = vpow2.f32 %v2326_v17  ;;  %v2325_v19 = vsub.f32 %v2317_v8, %v2323_v40 }
0x1066   :  { %v2328_v22 = vmul.f32 1.442695, %v2325_v19 }
0x1068   :  { %3135 = vpow2.f32 %v2328_v22 }
0x1069   :  { %3137 = vpow2.f32 %v2370_v21 }
0x106a   :  { %3139 = vpow2.f32 %v2372_v23 }
0x106e   :  { %v3134_v39 = vpop.eup %3133 }
0x106f   :  { %v2330_v13 = vsel %vm233_vm5, %v3134_v39, 0.0 }
0x1070   :  { %2331 = vadd.xlane.f32.xlu1 %v2330_v13 }
0x1072   :  { %v3136_v27 = vpop.eup %3135 }
0x1073   :  { %v2333_v28 = vsel %vm233_vm5, %v3136_v27, 0.0  ;;  %v3138_v29 = vpop.eup %3137 }
0x1074   :  { %2334 = vadd.xlane.f32.xlu1 %v2333_v28  ;;  %v2374_v30 = vsel %vm233_vm5, %v3138_v29, 0.0  ;;  %v3140_v31 = vpop.eup %3139 }
0x1075   :  { %v2377_v32 = vsel %vm233_vm5, %v3140_v31, 0.0 }
0x1078   :  { %2375 = vadd.xlane.f32.xlu1 %v2374_v30 }
0x107c   :  { %2378 = vadd.xlane.f32.xlu1 %v2377_v32 }
0x108d   :  { %3021 = vrot.lane.b32.xlu1 %v3020_v46, %s3237_s7 }
0x10fd   :  { %v2332_v44 = vpop.xlane.xlu1 %2331 }
0x1101   :  { %v2335_v33 = vpop.xlane.xlu1 %2334 }
0x1105   :  { %v2376_v34 = vpop.xlane.xlu1 %2375 }
0x1106   :  { %3141 = vrcp.f32 %v2376_v34 }
0x1107   :  { %3143 = vrcp.f32 %v2332_v44 }
0x1109   :  { %v2379_v35 = vpop.xlane.xlu1 %2378 }
0x110a   :  { %3145 = vrcp.f32 %v2379_v35 }
0x110b   :  { %3147 = vrcp.f32 %v2335_v33 }
0x110d   :  { %v3022_v37 = vpop.permute.xlu1 %3021 }
0x110e   :  { %v3024_v38 = vunpack.i.h.bf16 %v3022_v37  ;;  %v3023_v41 = vunpack.i.l.bf16 %v3022_v37 }
0x1110   :  { %v3142_v36 = vpop.eup %3141  ;;  %v2919_v53 = vpack.c.bf16 %v3024_v38, %v3023_v41 }
0x1111   :  { %v2382_v42 = vmul.f32 %v3142_v36, %v3138_v29  ;;  %v3144_v48 = vpop.eup %3143 }
0x1112   :  { %2920 = vmatprep.subr.bf16.mxu1 %v2919_v53  ;;  %v2338_v46 = vmul.f32 %v3144_v48, %v3134_v39 }
0x1113   :  { %2922 = vmatpush3.bf16.msra.mxu1 %v2919_v53  ;;  %2829 = vmatprep.mubr.msk.f32.mxu1 %vm233_vm5, %v2382_v42 }
0x1114   :  { %v3146_v43 = vpop.eup %3145  ;;  %2924 = vmatprep.subr.bf16.mxu1 %v3639_v47 }
0x1115   :  { %v2383_v45 = vmul.f32 %v3146_v43, %v3140_v31  ;;  %v3148_v49 = vpop.eup %3147 }
0x1116   :  { %v2339_v50 = vmul.f32 %v3148_v49, %v3136_v27 }
0x1117   :  { %2830 = vmatmul.mubr.msk.f32.vlgmr.msra.gmra.mrb[18].mxu1 %vm233_vm5, %v2383_v45 }
0x1118   :  { %2926 = vmatpush3.bf16.msra.mxu1 %v3639_v47  ;;  %2836 = vmatprep.mubr.msk.f32.mxu1 %vm233_vm5, %v2338_v46 }
0x111f   :  { %2837 = vmatmul.mubr.msk.f32.vlgmr.msra.gmra.mrb[18].mxu1 %vm233_vm5, %v2339_v50 }
0x11f2   :  { %v2838_v54 = vpop.f32.mrb[18].mxu1 }
0x11f3   :  { %v2553_v51 = vmul.f32 0.5, %v2838_v54  ;;  %v2543_v55 = vpop.f32.mrb[19].mxu1 }
0x11f4   :  { %v2552_v9 = vmul.f32 0.5, %v2543_v55 }
0x11f5   :  { %v2561_v56 = vadd.f32 %v2616_v52, %v2553_v51 }
0x11f6   :  { %v2560_v57 = vadd.f32 %v2616_v52, %v2552_v9 }
0x11f7   :  { %2564 = vst.msk [vmem:[%s3687_s10 + $0x8] sm:$0xff] %vm2562_vm11, %v2561_v56 }
0x11f8   :  { %2563 = vst.msk [vmem:[%s3687_s10] sm:$0xff] %vm2562_vm11, %v2560_v57 }
0x11f9   :  { %2569 = vsyncpa [#allocation3], 1 }
0x11fa   :  { %2570 = vsyncpa [#allocation5], 1 }

</bundles_post_ra>
